<compile_context>
chip_gen: v7x
topology: tpu7x:2x2x1
jax: 0.10.0
libtpu: 0.0.40
codegen_flags: <defaults>
</compile_context>

<pallas_src>
import functools

import jax
import jax.numpy as jnp
from jax.experimental import pallas as pl
from jax.experimental.pallas import tpu as pltpu

SLOPE = 0.1       # return_act(act_name, slope) analogue: LeakyReLU(slope)
LANE = 128        # TPU lane width; every layer output is zero-padded to this

# Packing order of the 14 parameter tensors inside the single weight slab.
# Each parameter owns a LANE-row block; true values live in the top-left
# (rows, cols) corner, the rest is zero, so reading a full (LANE, LANE)
# window yields the mathematically identical zero-padded operator.
ORDER = ("ew0", "eb0", "ec0", "ew1", "eb1", "ec1",
         "pw0", "pb0", "pw1", "pb1",
         "rw0", "rb0", "rw1", "rb1")
_BASE = {k: i * LANE for i, k in enumerate(ORDER)}
SLAB_ROWS = len(ORDER) * LANE


def _act(x):
    # LeakyReLU(0.1): max(x, 0.1*x)  (mul+max instead of cmp+select+mul)
    return jnp.maximum(x, SLOPE * x)


def _mm(x2d, w):
    return jnp.dot(x2d, w, preferred_element_type=jnp.float32)


def _mm3(x3d, w):
    # (p, n, k) @ (k, m) via a flat 2-D MXU matmul (collapse leading dims).
    p, n, k = x3d.shape
    return _mm(x3d.reshape(p * n, k), w).reshape(p, n, w.shape[1])


def pack_weights(params):
    """Pack all 14 parameter tensors into one (SLAB_ROWS, LANE) f32 slab."""
    slab = jnp.zeros((SLAB_ROWS, LANE), jnp.float32)
    for k in ORDER:
        w = params[k].astype(jnp.float32)
        r, c = w.shape
        slab = slab.at[_BASE[k]:_BASE[k] + r, :c].set(w)
    return slab


def _make_kernel(n1, n2, in_dim, tp):
    def w_at(w_ref, name, rows):
        base = _BASE[name]
        return w_ref[base:base + rows, :]          # static slice of the slab

    def kernel(x_ref, w_ref, o_ref):
        x = x_ref[...].astype(jnp.float32)          # (tp, n1+n2, in_dim)
        m1 = jnp.mean(x[:, :n1, :], axis=1)         # (tp, in_dim)
        m2 = jnp.mean(x[:, n1:, :], axis=1)

        # ---- SharedMLP encoder (2 layers), both sets in one matmul --------
        for li, (wk, bk, ck) in enumerate((("ew0", "eb0", "ec0"),
                                           ("ew1", "eb1", "ec1"))):
            rows = in_dim if li == 0 else LANE      # padded width from layer 1 on
            w = w_at(w_ref, wk, rows)               # (rows, LANE)
            b = w_at(w_ref, bk, 1)                  # (1, LANE)
            c = w_at(w_ref, ck, rows)               # (rows, LANE)
            shared = _mm(m1 + m2, c)                # (tp, LANE), per-pair
            x = _act(_mm3(x, w) + b) + shared[:, None, :]
            m1 = jnp.mean(x[:, :n1, :], axis=1)     # reused as e1/e2 after loop
            m2 = jnp.mean(x[:, n1:, :], axis=1)

        # ---- phi MLP on the two stacked embeddings (one matmul per layer) --
        e = jnp.concatenate([m1, m2], axis=0)       # (2*tp, LANE)
        for wk, bk in (("pw0", "pb0"), ("pw1", "pb1")):
            e = _act(_mm(e, w_at(w_ref, wk, LANE)) + w_at(w_ref, bk, 1))
        e1 = e[:tp]
        e2 = e[tp:]

        # ---- rho MLP on the sum --------------------------------------------
        out = e1 + e2
        for wk, bk in (("rw0", "rb0"), ("rw1", "rb1")):
            out = _act(_mm(out, w_at(w_ref, wk, LANE)) + w_at(w_ref, bk, 1))

        # lane-dense (tp, 128) writes into one packed output slab
        o_ref[0] = out                              # column 0 = rho scalar / pair
        o_ref[1] = e1                               # columns [0, phi_out)
        o_ref[2] = e2

    return kernel


@functools.partial(jax.jit, static_argnames=("pairs_per_step",))
def shared_product_net(x1, x2, params, *, pairs_per_step=8):
    """Batched forward.

    x1: (P, N1, D), x2: (P, N2, D)  ->  out (P, 1), embd1 (P, phi_out),
    embd2 (P, phi_out), matching the PyTorch module applied pair-by-pair.
    """
    P, n1, d = x1.shape
    _, n2, _ = x2.shape
    phi_out = params["pw1"].shape[1]

    tp = pairs_per_step
    p_pad = -(-P // tp) * tp

    x = jnp.concatenate([x1, x2], axis=1).astype(jnp.float32)   # (P, n1+n2, d)
    if p_pad != P:
        x = jnp.pad(x, ((0, p_pad - P), (0, 0), (0, 0)))
    slab = pack_weights(params)

    out = pl.pallas_call(
        _make_kernel(n1, n2, d, tp),
        out_shape=jax.ShapeDtypeStruct((3, p_pad, LANE), jnp.float32),
        grid=(p_pad // tp,),
        in_specs=[
            # pair tiles stream through the grid (pipelined DMA)
            pl.BlockSpec((tp, n1 + n2, d), lambda i: (i, 0, 0)),
            # weight slab: constant block index -> DMA'd once, stays resident
            pl.BlockSpec((SLAB_ROWS, LANE), lambda i: (0, 0)),
        ],
        out_specs=pl.BlockSpec((3, tp, LANE), lambda i: (0, i, 0)),
        compiler_params=pltpu.CompilerParams(
            dimension_semantics=("parallel",),      # v7x: split pairs over 2 TCs
        ),
    )(x, slab)

    return out[0, :P, :1], out[1, :P, :phi_out], out[2, :P, :phi_out]


# ----------------------------- parameter init --------------------------------
def _xavier_uniform(key, fan_in, fan_out):
    a = jnp.sqrt(6.0 / (fan_in + fan_out))
    return jax.random.uniform(key, (fan_in, fan_out), jnp.float32, -a, a)


def _bias(key, fan_in, fan_out):
    bound = 1.0 / jnp.sqrt(jnp.float32(fan_in))
    return jax.random.uniform(key, (1, fan_out), jnp.float32, -bound, bound)


def init_params(key, in_dim, enc_hid, enc_out, phi_hid, phi_out, rho_hid):
    keys = jax.random.split(key, 20)
    p = {}
    # encoder (SharedMLP): Linear + common param per layer
    p["ew0"] = _xavier_uniform(keys[0], in_dim, enc_hid)
    p["eb0"] = _bias(keys[1], in_dim, enc_hid)
    p["ec0"] = _xavier_uniform(keys[2], in_dim, enc_hid)
    p["ew1"] = _xavier_uniform(keys[3], enc_hid, enc_out)
    p["eb1"] = _bias(keys[4], enc_hid, enc_out)
    p["ec1"] = _xavier_uniform(keys[5], enc_hid, enc_out)
    # phi
    p["pw0"] = _xavier_uniform(keys[6], enc_out, phi_hid)
    p["pb0"] = _bias(keys[7], enc_out, phi_hid)
    p["pw1"] = _xavier_uniform(keys[8], phi_hid, phi_out)
    p["pb1"] = _bias(keys[9], phi_hid, phi_out)
    # rho (final output dim is hard-coded to 1 in SharedProductNet)
    p["rw0"] = _xavier_uniform(keys[10], phi_out, rho_hid)
    p["rb0"] = _bias(keys[11], phi_out, rho_hid)
    p["rw1"] = _xavier_uniform(keys[12], rho_hid, 1)
    p["rb1"] = _bias(keys[13], rho_hid, 1)
    return p


# ----------------------------- pure-JAX reference ----------------------------
def reference_forward(x1, x2, p):
    def act(x):
        return jnp.where(x > 0, x, SLOPE * x)

    x1 = x1.astype(jnp.float32)
    x2 = x2.astype(jnp.float32)
    for (w, b, c) in (("ew0", "eb0", "ec0"), ("ew1", "eb1", "ec1")):
        shared = (x1.mean(0) + x2.mean(0)) @ p[c]
        x1 = act(x1 @ p[w] + p[b]) + shared[None, :]
        x2 = act(x2 @ p[w] + p[b]) + shared[None, :]
    e1, e2 = x1.mean(0), x2.mean(0)
    for (w, b) in (("pw0", "pb0"), ("pw1", "pb1")):
        e1 = act(e1 @ p[w] + p[b][0])
        e2 = act(e2 @ p[w] + p[b][0])
    out = e1 + e2
    for (w, b) in (("rw0", "rb0"), ("rw1", "rb1")):
        out = act(out @ p[w] + p[b][0])
    return out, e1, e2


if __name__ == "__main__":
    key = jax.random.PRNGKey(0)
    k_x1, k_x2, k_p = jax.random.split(key, 3)

    # small shapes: a batch of 16 pairs of point-sets, 8 elements each, 16-dim
    P, N1, N2, IN_DIM = 16, 8, 8, 16
    ENC_HID, ENC_OUT = 32, 32
    PHI_HID, PHI_OUT = 32, 32
    RHO_HID = 32

    x1 = jax.random.normal(k_x1, (P, N1, IN_DIM), dtype=jnp.float32)
    x2 = jax.random.normal(k_x2, (P, N2, IN_DIM), dtype=jnp.float32)
    params = init_params(k_p, IN_DIM, ENC_HID, ENC_OUT, PHI_HID, PHI_OUT, RHO_HID)

    out, embd1, embd2 = shared_product_net(x1, x2, params, pairs_per_step=8)
    jax.block_until_ready((out, embd1, embd2))

    ref_out, ref_e1, ref_e2 = jax.vmap(
        lambda a, b: reference_forward(a, b, params))(x1, x2)

    assert out.shape == (P, 1) and embd1.shape == (P, PHI_OUT)
    assert jnp.allclose(out, ref_out, atol=2e-5, rtol=2e-5)
    assert jnp.allclose(embd1, ref_e1, atol=2e-5, rtol=2e-5)
    assert jnp.allclose(embd2, ref_e2, atol=2e-5, rtol=2e-5)

    print("KERNEL_OK")
</pallas_src>

<mosaic_0001>
module attributes {stable_mosaic.version = 11 : i64} {
  func.func @kernel(%arg0: i32, %arg1: memref<8x16x16xf32, #tpu.memory_space<vmem>>, %arg2: memref<1792x128xf32, #tpu.memory_space<vmem>>, %arg3: memref<3x8x128xf32, #tpu.memory_space<vmem>>) attributes {dimension_semantics = [#tpu.dimension_semantics<parallel>], iteration_bounds = array<i64: 2>, scalar_prefetch = 0 : i64, scratch_operands = 0 : i64, tpu.core_type = #tpu.core_type<tc>, window_params = [{transform_indices = @transform_0, window_bounds = array<i64: 8, 16, 16>}, {pipeline_mode = #tpu.pipeline_mode<synchronous>, transform_indices = @transform_1, window_bounds = array<i64: 1792, 128>}, {transform_indices = @transform_2, window_bounds = array<i64: 3, 8, 128>}]} {
    %c0 = arith.constant 0 : index
    %c0_0 = arith.constant 0 : index
    %c0_1 = arith.constant 0 : index
    %0 = vector.load %arg1[%c0, %c0_0, %c0_1] : memref<8x16x16xf32, #tpu.memory_space<vmem>>, vector<8x16x16xf32>
    %1 = vector.extract_strided_slice %0 {offsets = [0, 0, 0], sizes = [8, 8, 16], strides = [1, 1, 1]} : vector<8x16x16xf32> to vector<8x8x16xf32>
    %cst = arith.constant dense<0.000000e+00> : vector<8x16xf32>
    %2 = vector.multi_reduction <add>, %1, %cst [1] : vector<8x8x16xf32> to vector<8x16xf32>
    %cst_2 = arith.constant 8.000000e+00 : f32
    %3 = vector.broadcast %cst_2 : f32 to vector<8x16xf32>
    %4 = arith.divf %2, %3 : vector<8x16xf32>
    %5 = vector.extract_strided_slice %0 {offsets = [0, 8, 0], sizes = [8, 8, 16], strides = [1, 1, 1]} : vector<8x16x16xf32> to vector<8x8x16xf32>
    %cst_3 = arith.constant dense<0.000000e+00> : vector<8x16xf32>
    %6 = vector.multi_reduction <add>, %5, %cst_3 [1] : vector<8x8x16xf32> to vector<8x16xf32>
    %cst_4 = arith.constant 8.000000e+00 : f32
    %7 = vector.broadcast %cst_4 : f32 to vector<8x16xf32>
    %8 = arith.divf %6, %7 : vector<8x16xf32>
    %c0_5 = arith.constant 0 : index
    %c0_6 = arith.constant 0 : index
    %9 = vector.load %arg2[%c0_5, %c0_6] : memref<1792x128xf32, #tpu.memory_space<vmem>>, vector<16x128xf32>
    %c128 = arith.constant 128 : index
    %c0_7 = arith.constant 0 : index
    %10 = vector.load %arg2[%c128, %c0_7] : memref<1792x128xf32, #tpu.memory_space<vmem>>, vector<1x128xf32>
    %c256 = arith.constant 256 : index
    %c0_8 = arith.constant 0 : index
    %11 = vector.load %arg2[%c256, %c0_8] : memref<1792x128xf32, #tpu.memory_space<vmem>>, vector<16x128xf32>
    %12 = arith.addf %4, %8 : vector<8x16xf32>
    %cst_9 = arith.constant dense<0.000000e+00> : vector<8x128xf32>
    %13 = tpu.matmul %12, %11, %cst_9 {dimension_numbers = #tpu.dot_dimension_numbers<[1], [0], [0], [1], [0, 0, 1, 1], [], []>} : vector<8x16xf32>, vector<16x128xf32>, vector<8x128xf32> -> vector<8x128xf32>
    %14 = vector.shape_cast %0 : vector<8x16x16xf32> to vector<128x16xf32>
    %cst_10 = arith.constant dense<0.000000e+00> : vector<128x128xf32>
    %15 = tpu.matmul %14, %9, %cst_10 {dimension_numbers = #tpu.dot_dimension_numbers<[1], [0], [0], [1], [0, 0, 1, 1], [], []>} : vector<128x16xf32>, vector<16x128xf32>, vector<128x128xf32> -> vector<128x128xf32>
    %16 = vector.shape_cast %15 : vector<128x128xf32> to vector<8x16x128xf32>
    %17 = vector.shape_cast %10 : vector<1x128xf32> to vector<1x1x128xf32>
    %18 = vector.broadcast %17 : vector<1x1x128xf32> to vector<8x16x128xf32>
    %19 = arith.addf %16, %18 : vector<8x16x128xf32>
    %cst_11 = arith.constant 1.000000e-01 : f32
    %20 = vector.broadcast %cst_11 : f32 to vector<8x16x128xf32>
    %21 = arith.mulf %20, %19 : vector<8x16x128xf32>
    %22 = arith.maximumf %19, %21 : vector<8x16x128xf32>
    %23 = vector.shape_cast %13 : vector<8x128xf32> to vector<8x1x128xf32>
    %24 = vector.broadcast %23 : vector<8x1x128xf32> to vector<8x16x128xf32>
    %25 = arith.addf %22, %24 : vector<8x16x128xf32>
    %26 = vector.extract_strided_slice %25 {offsets = [0, 0, 0], sizes = [8, 8, 128], strides = [1, 1, 1]} : vector<8x16x128xf32> to vector<8x8x128xf32>
    %cst_12 = arith.constant dense<0.000000e+00> : vector<8x128xf32>
    %27 = vector.multi_reduction <add>, %26, %cst_12 [1] : vector<8x8x128xf32> to vector<8x128xf32>
    %cst_13 = arith.constant 8.000000e+00 : f32
    %28 = vector.broadcast %cst_13 : f32 to vector<8x128xf32>
    %29 = arith.divf %27, %28 : vector<8x128xf32>
    %30 = vector.extract_strided_slice %25 {offsets = [0, 8, 0], sizes = [8, 8, 128], strides = [1, 1, 1]} : vector<8x16x128xf32> to vector<8x8x128xf32>
    %cst_14 = arith.constant dense<0.000000e+00> : vector<8x128xf32>
    %31 = vector.multi_reduction <add>, %30, %cst_14 [1] : vector<8x8x128xf32> to vector<8x128xf32>
    %cst_15 = arith.constant 8.000000e+00 : f32
    %32 = vector.broadcast %cst_15 : f32 to vector<8x128xf32>
    %33 = arith.divf %31, %32 : vector<8x128xf32>
    %c384 = arith.constant 384 : index
    %c0_16 = arith.constant 0 : index
    %34 = vector.load %arg2[%c384, %c0_16] : memref<1792x128xf32, #tpu.memory_space<vmem>>, vector<128x128xf32>
    %c512 = arith.constant 512 : index
    %c0_17 = arith.constant 0 : index
    %35 = vector.load %arg2[%c512, %c0_17] : memref<1792x128xf32, #tpu.memory_space<vmem>>, vector<1x128xf32>
    %c640 = arith.constant 640 : index
    %c0_18 = arith.constant 0 : index
    %36 = vector.load %arg2[%c640, %c0_18] : memref<1792x128xf32, #tpu.memory_space<vmem>>, vector<128x128xf32>
    %37 = arith.addf %29, %33 : vector<8x128xf32>
    %cst_19 = arith.constant dense<0.000000e+00> : vector<8x128xf32>
    %38 = tpu.matmul %37, %36, %cst_19 {dimension_numbers = #tpu.dot_dimension_numbers<[1], [0], [0], [1], [0, 0, 1, 1], [], []>} : vector<8x128xf32>, vector<128x128xf32>, vector<8x128xf32> -> vector<8x128xf32>
    %39 = vector.shape_cast %25 : vector<8x16x128xf32> to vector<128x128xf32>
    %cst_20 = arith.constant dense<0.000000e+00> : vector<128x128xf32>
    %40 = tpu.matmul %39, %34, %cst_20 {dimension_numbers = #tpu.dot_dimension_numbers<[1], [0], [0], [1], [0, 0, 1, 1], [], []>} : vector<128x128xf32>, vector<128x128xf32>, vector<128x128xf32> -> vector<128x128xf32>
    %41 = vector.shape_cast %40 : vector<128x128xf32> to vector<8x16x128xf32>
    %42 = vector.shape_cast %35 : vector<1x128xf32> to vector<1x1x128xf32>
    %43 = vector.broadcast %42 : vector<1x1x128xf32> to vector<8x16x128xf32>
    %44 = arith.addf %41, %43 : vector<8x16x128xf32>
    %cst_21 = arith.constant 1.000000e-01 : f32
    %45 = vector.broadcast %cst_21 : f32 to vector<8x16x128xf32>
    %46 = arith.mulf %45, %44 : vector<8x16x128xf32>
    %47 = arith.maximumf %44, %46 : vector<8x16x128xf32>
    %48 = vector.shape_cast %38 : vector<8x128xf32> to vector<8x1x128xf32>
    %49 = vector.broadcast %48 : vector<8x1x128xf32> to vector<8x16x128xf32>
    %50 = arith.addf %47, %49 : vector<8x16x128xf32>
    %51 = vector.extract_strided_slice %50 {offsets = [0, 0, 0], sizes = [8, 8, 128], strides = [1, 1, 1]} : vector<8x16x128xf32> to vector<8x8x128xf32>
    %cst_22 = arith.constant dense<0.000000e+00> : vector<8x128xf32>
    %52 = vector.multi_reduction <add>, %51, %cst_22 [1] : vector<8x8x128xf32> to vector<8x128xf32>
    %cst_23 = arith.constant 8.000000e+00 : f32
    %53 = vector.broadcast %cst_23 : f32 to vector<8x128xf32>
    %54 = arith.divf %52, %53 : vector<8x128xf32>
    %55 = vector.extract_strided_slice %50 {offsets = [0, 8, 0], sizes = [8, 8, 128], strides = [1, 1, 1]} : vector<8x16x128xf32> to vector<8x8x128xf32>
    %cst_24 = arith.constant dense<0.000000e+00> : vector<8x128xf32>
    %56 = vector.multi_reduction <add>, %55, %cst_24 [1] : vector<8x8x128xf32> to vector<8x128xf32>
    %cst_25 = arith.constant 8.000000e+00 : f32
    %57 = vector.broadcast %cst_25 : f32 to vector<8x128xf32>
    %58 = arith.divf %56, %57 : vector<8x128xf32>
    %59 = tpu.concatenate %54, %58 in 0 : vector<8x128xf32>, vector<8x128xf32> -> vector<16x128xf32>
    %c768 = arith.constant 768 : index
    %c0_26 = arith.constant 0 : index
    %60 = vector.load %arg2[%c768, %c0_26] : memref<1792x128xf32, #tpu.memory_space<vmem>>, vector<128x128xf32>
    %cst_27 = arith.constant dense<0.000000e+00> : vector<16x128xf32>
    %61 = tpu.matmul %59, %60, %cst_27 {dimension_numbers = #tpu.dot_dimension_numbers<[1], [0], [0], [1], [0, 0, 1, 1], [], []>} : vector<16x128xf32>, vector<128x128xf32>, vector<16x128xf32> -> vector<16x128xf32>
    %c896 = arith.constant 896 : index
    %c0_28 = arith.constant 0 : index
    %62 = vector.load %arg2[%c896, %c0_28] : memref<1792x128xf32, #tpu.memory_space<vmem>>, vector<1x128xf32>
    %63 = vector.broadcast %62 : vector<1x128xf32> to vector<16x128xf32>
    %64 = arith.addf %61, %63 : vector<16x128xf32>
    %cst_29 = arith.constant 1.000000e-01 : f32
    %65 = vector.broadcast %cst_29 : f32 to vector<16x128xf32>
    %66 = arith.mulf %65, %64 : vector<16x128xf32>
    %67 = arith.maximumf %64, %66 : vector<16x128xf32>
    %c1024 = arith.constant 1024 : index
    %c0_30 = arith.constant 0 : index
    %68 = vector.load %arg2[%c1024, %c0_30] : memref<1792x128xf32, #tpu.memory_space<vmem>>, vector<128x128xf32>
    %cst_31 = arith.constant dense<0.000000e+00> : vector<16x128xf32>
    %69 = tpu.matmul %67, %68, %cst_31 {dimension_numbers = #tpu.dot_dimension_numbers<[1], [0], [0], [1], [0, 0, 1, 1], [], []>} : vector<16x128xf32>, vector<128x128xf32>, vector<16x128xf32> -> vector<16x128xf32>
    %c1152 = arith.constant 1152 : index
    %c0_32 = arith.constant 0 : index
    %70 = vector.load %arg2[%c1152, %c0_32] : memref<1792x128xf32, #tpu.memory_space<vmem>>, vector<1x128xf32>
    %71 = vector.broadcast %70 : vector<1x128xf32> to vector<16x128xf32>
    %72 = arith.addf %69, %71 : vector<16x128xf32>
    %cst_33 = arith.constant 1.000000e-01 : f32
    %73 = vector.broadcast %cst_33 : f32 to vector<16x128xf32>
    %74 = arith.mulf %73, %72 : vector<16x128xf32>
    %75 = arith.maximumf %72, %74 : vector<16x128xf32>
    %76 = vector.extract_strided_slice %75 {offsets = [0, 0], sizes = [8, 128], strides = [1, 1]} : vector<16x128xf32> to vector<8x128xf32>
    %77 = vector.extract_strided_slice %75 {offsets = [8, 0], sizes = [8, 128], strides = [1, 1]} : vector<16x128xf32> to vector<8x128xf32>
    %78 = arith.addf %76, %77 : vector<8x128xf32>
    %c1280 = arith.constant 1280 : index
    %c0_34 = arith.constant 0 : index
    %79 = vector.load %arg2[%c1280, %c0_34] : memref<1792x128xf32, #tpu.memory_space<vmem>>, vector<128x128xf32>
    %cst_35 = arith.constant dense<0.000000e+00> : vector<8x128xf32>
    %80 = tpu.matmul %78, %79, %cst_35 {dimension_numbers = #tpu.dot_dimension_numbers<[1], [0], [0], [1], [0, 0, 1, 1], [], []>} : vector<8x128xf32>, vector<128x128xf32>, vector<8x128xf32> -> vector<8x128xf32>
    %c1408 = arith.constant 1408 : index
    %c0_36 = arith.constant 0 : index
    %81 = vector.load %arg2[%c1408, %c0_36] : memref<1792x128xf32, #tpu.memory_space<vmem>>, vector<1x128xf32>
    %82 = vector.broadcast %81 : vector<1x128xf32> to vector<8x128xf32>
    %83 = arith.addf %80, %82 : vector<8x128xf32>
    %cst_37 = arith.constant 1.000000e-01 : f32
    %84 = vector.broadcast %cst_37 : f32 to vector<8x128xf32>
    %85 = arith.mulf %84, %83 : vector<8x128xf32>
    %86 = arith.maximumf %83, %85 : vector<8x128xf32>
    %c1536 = arith.constant 1536 : index
    %c0_38 = arith.constant 0 : index
    %87 = vector.load %arg2[%c1536, %c0_38] : memref<1792x128xf32, #tpu.memory_space<vmem>>, vector<128x128xf32>
    %cst_39 = arith.constant dense<0.000000e+00> : vector<8x128xf32>
    %88 = tpu.matmul %86, %87, %cst_39 {dimension_numbers = #tpu.dot_dimension_numbers<[1], [0], [0], [1], [0, 0, 1, 1], [], []>} : vector<8x128xf32>, vector<128x128xf32>, vector<8x128xf32> -> vector<8x128xf32>
    %c1664 = arith.constant 1664 : index
    %c0_40 = arith.constant 0 : index
    %89 = vector.load %arg2[%c1664, %c0_40] : memref<1792x128xf32, #tpu.memory_space<vmem>>, vector<1x128xf32>
    %90 = vector.broadcast %89 : vector<1x128xf32> to vector<8x128xf32>
    %91 = arith.addf %88, %90 : vector<8x128xf32>
    %cst_41 = arith.constant 1.000000e-01 : f32
    %92 = vector.broadcast %cst_41 : f32 to vector<8x128xf32>
    %93 = arith.mulf %92, %91 : vector<8x128xf32>
    %94 = arith.maximumf %91, %93 : vector<8x128xf32>
    %c0_42 = arith.constant 0 : index
    %c0_43 = arith.constant 0 : index
    %c0_44 = arith.constant 0 : index
    %95 = vector.load %arg3[%c0_42, %c0_43, %c0_44] : memref<3x8x128xf32, #tpu.memory_space<vmem>>, vector<1x8x128xf32>
    %96 = vector.shape_cast %95 : vector<1x8x128xf32> to vector<8x128xf32>
    %97 = vector.shape_cast %94 : vector<8x128xf32> to vector<1x8x128xf32>
    tpu.vector_store %arg3[%c0_42, %c0_43, %c0_44], %97 {strides = array<i32>} : memref<3x8x128xf32, #tpu.memory_space<vmem>>, vector<1x8x128xf32>,
    %c1 = arith.constant 1 : index
    %c0_45 = arith.constant 0 : index
    %c0_46 = arith.constant 0 : index
    %98 = vector.load %arg3[%c1, %c0_45, %c0_46] : memref<3x8x128xf32, #tpu.memory_space<vmem>>, vector<1x8x128xf32>
    %99 = vector.shape_cast %98 : vector<1x8x128xf32> to vector<8x128xf32>
    %100 = vector.shape_cast %76 : vector<8x128xf32> to vector<1x8x128xf32>
    tpu.vector_store %arg3[%c1, %c0_45, %c0_46], %100 {strides = array<i32>} : memref<3x8x128xf32, #tpu.memory_space<vmem>>, vector<1x8x128xf32>,
    %c2 = arith.constant 2 : index
    %c0_47 = arith.constant 0 : index
    %c0_48 = arith.constant 0 : index
    %101 = vector.load %arg3[%c2, %c0_47, %c0_48] : memref<3x8x128xf32, #tpu.memory_space<vmem>>, vector<1x8x128xf32>
    %102 = vector.shape_cast %101 : vector<1x8x128xf32> to vector<8x128xf32>
    %103 = vector.shape_cast %77 : vector<8x128xf32> to vector<1x8x128xf32>
    tpu.vector_store %arg3[%c2, %c0_47, %c0_48], %103 {strides = array<i32>} : memref<3x8x128xf32, #tpu.memory_space<vmem>>, vector<1x8x128xf32>,
    return
  }
  func.func @transform_0(%arg0: i32) -> (i32, i32, i32) {
    %c0_i32 = arith.constant 0 : i32
    %c0_i32_0 = arith.constant 0 : i32
    %c0_i32_1 = arith.constant 0 : i32
    return %arg0, %c0_i32, %c0_i32_0 : i32, i32, i32
  }
  func.func @transform_1(%arg0: i32) -> (i32, i32) {
    %c0_i32 = arith.constant 0 : i32
    %c0_i32_0 = arith.constant 0 : i32
    %c0_i32_1 = arith.constant 0 : i32
    return %c0_i32, %c0_i32_0 : i32, i32
  }
  func.func @transform_2(%arg0: i32) -> (i32, i32, i32) {
    %c0_i32 = arith.constant 0 : i32
    %c0_i32_0 = arith.constant 0 : i32
    %c0_i32_1 = arith.constant 0 : i32
    return %c0_i32, %arg0, %c0_i32_0 : i32, i32, i32
  }
}

</mosaic_0001>

<bundles_post_ra>
// kernel: shared_product_net.1
= control target key start
LH: loop header
LB: loop body
LE: loop exit
PB: predicated region body
PF: predicated region fallthrough
CT: control target
= control target key end

     0   :  { %s2614_s9 = smov 0   ;;  %s2616_s10 = smov 0   ;;  %s3406_s0 = inlined_call_operand.vmem [shape: f32[16,16,16], index: 0, kind: input, shape index: {}]   ;;  %s3407_s1 = inlined_call_operand.vmem [shape: f32[1792,128], index: 1, kind: input, shape index: {}]   ;;  %s3408_s2 = inlined_call_operand.vmem [shape: f32[3,16,128], index: 2, kind: output, shape index: {}]  }
   0x1   :  { %s2618_s11 = smov 0  }
   0x2 LB: > { %s1924_s12 = sadd.s32 4294967295, %s2593_s11   ;;  %s2627_s13 = sadd.s32 1, %s2593_s11   ;;  %s2593_s11 = sphi %s2618_s11, %s3412_s11   ;;  %s2589_s10 = sphi %s2616_s10, %s3411_s10   ;;  %s2585_s9 = sphi %s2614_s9, %s3410_s9  }
   0x3   : > { %s63_s14 = ssub.s32 %s2593_s11, %s2627_s13  ;;  %s66_s15 = sadd.s32 1, %s2589_s10 }
   0x4   : > { %p64_p0 = scmp.eq.s32.totalorder %s63_s14, 0  ;;  %p76_p1 = scmp.ne.s32.totalorder %s2589_s10, %s2585_s9 }
   0x5   : > { %p77_p2 = scmp.eq.s32.totalorder %s1924_s12, 1  ;;  %p1928_p3 = scmp.ge.s32.totalorder %s2593_s11, 1 }
   0x6   : > { %s2634_s16 = scalar_select %p64_p0, %s2589_s10, %s66_s15  }
   0x7   : > { %p2636_p4 = por %p77_p2, %p76_p1  ;;  %p114_p5 = scmp.lt.s32.totalorder %s2593_s11, 3 }
   0x9   : > { %p115_p6 = pnand %p1928_p3, %p114_p5 }
   0xa   : > { %v289_v0 = vld [vmem:[%s3407_s1] sm:$0xff] (!%p115_p6)  ;;  %v290_v1 = vld [vmem:[%s3407_s1 + $0x8] sm:$0xff] (!%p115_p6)  ;;  %s2646_s22 = sshll.u32 (!%p115_p6), %s1924_s12, 3  ;;  %v2595_v3 = vmov (!%p115_p6), 0.0|0.0   ;;  %vm2596_vm0 = vmmov (!%p115_p6), 0   ;;  %v2597_v7 = vmov (!%p115_p6), 0.0  }
   0xb   : > { %118 = sbr.rel (%p115_p6) target bundleno = 1470 (0x5be), region = 28  ;;  %v2370_v2 = vpack.c.bf16 (!%p115_p6), %v290_v1, %v289_v0  ;;  %p137_p7 = scmp.lt.s32.totalorder (!%p115_p6), %s2646_s22, 15  ;;  %2367 = vmatprep.subr.bf16.mxu0 (!%p115_p6), %v2595_v3  ;;  %v292_v4 = vld [vmem:[%s3407_s1 + $0x100] sm:$0xff] (!%p115_p6)  ;;  %v293_v5 = vld [vmem:[%s3407_s1 + $0x108] sm:$0xff] (!%p115_p6)  ;;  %2105 = vmatprep.mubr.msk.f32.mxu0 (!%p115_p6), %vm2596_vm0, %v2597_v7  ;;  %vm159_vm1 = vcmask (!%p115_p6), 130048   ;;  %vm310_vm2 = vcmask (!%p115_p6), 1041409  }
   0xc   : > { %v2368_v6 = vpack.c.bf16 (!%p115_p6), %v293_v5, %v292_v4  ;;  %vm312_vm3 = vcmask (!%p115_p6), 1042434   ;;  %vm314_vm4 = vcmask (!%p115_p6), 1043459   ;;  %vm316_vm5 = vcmask (!%p115_p6), 1044484   ;;  %s133_s24 = sand.u32 (!%p115_p6), 1, %s2585_s9  }
   0xd   : > { %2371 = vmatprep.subr.bf16.mxu1 (!%p115_p6), %v2370_v2  ;;  %vm318_vm6 = vcmask (!%p115_p6), 1045509   ;;  %vm320_vm7 = vcmask (!%p115_p6), 1046534   ;;  %vm322_vm8 = vcmask (!%p115_p6), 1047559  }
   0xe   : > { %2373 = vmatpush3.bf16.msra.mxu1 (!%p115_p6), %v2370_v2  ;;  %2369 = vmatpush3.bf16.msra.mxu0 (!%p115_p6), %v2368_v6 }
   0xf   : > { %2374 = vmatprep.subr.bf16.mxu0 (!%p115_p6), %v2595_v3 }
  0x12   : > { %s138_s27 = scalar_select %p137_p7, %s2646_s22, 15 }
  0x13   : > { %s1833_s19 = scalar_lea.vmem (%p2636_p4), %s3408_s2, %s2646_s22 }
  0x14   : > { %s1960_s28 = sshll.u32 %s138_s27, 4  ;;  %s2542_s27 = smul.u32 24, %s133_s24 }
  0x15   : > { %s2663_s3 = scalar_lea.vmem %s3406_s0, %s1960_s28 }
  0x16   : > { %v143_v8 = vld [vmem:[%s2663_s3] sm:$0xff]  ;;  %v144_v9 = vld [vmem:[%s2663_s3 + $0x8] sm:$0xff]  ;;  %v145_v10 = vld [vmem:[%s2663_s3 + $0x10] sm:$0xff]  ;;  %s3363_s28 = scalar_lea.vmem [#allocation2], %s2542_s27 }
  0x17   : > { %v160_v11 = vsel %vm159_vm1, %v143_v8, 0.0  ;;  %2112 = vmatprep.mubr.msk.f32.mxu1 %vm159_vm1, %v143_v8  ;;  %v225_v12 = vsel %vm159_vm1, %v144_v9, 0.0  ;;  %v167_v13 = vsel %vm159_vm1, %v145_v10, 0.0  ;;  %v146_v14 = vld [vmem:[%s2663_s3 + $0x18] sm:$0xff]  ;;  %v147_v15 = vld [vmem:[%s2663_s3 + $0x20] sm:$0xff]  ;;  %v148_v16 = vld [vmem:[%s2663_s3 + $0x28] sm:$0xff] }
  0x18   : > { %v161_v17 = vrot.slane %v160_v11, 4  ;;  %v226_v18 = vrot.slane %v225_v12, 4  ;;  %2113 = vmatmul.mubr.msk.f32.vlgmr.msra.gmra.mrb[0].mxu1 %vm159_vm1, %v144_v9  ;;  %v168_v19 = vrot.slane %v167_v13, 4  ;;  %v232_v20 = vsel %vm159_vm1, %v146_v14, 0.0  ;;  %v149_v21 = vld [vmem:[%s2663_s3 + $0x30] sm:$0xff]  ;;  %v150_v22 = vld [vmem:[%s2663_s3 + $0x38] sm:$0xff] }
  0x19   : > { %2115 = vmatprep.mubr.msk.f32.mxu1 %vm159_vm1, %v145_v10  ;;  %v233_v23 = vrot.slane %v232_v20, 4  ;;  %v174_v24 = vsel %vm159_vm1, %v147_v15, 0.0  ;;  %v239_v25 = vsel %vm159_vm1, %v148_v16, 0.0  ;;  %v181_v26 = vsel %vm159_vm1, %v149_v21, 0.0  ;;  %v151_v4 = vld [vmem:[%s2663_s3 + $0x40] sm:$0xff]  ;;  %v152_v5 = vld [vmem:[%s2663_s3 + $0x48] sm:$0xff] }
  0x1a   : > { %v162_v27 = vadd.f32 %v161_v17, %v160_v11  ;;  %v227_v28 = vadd.f32 %v226_v18, %v225_v12  ;;  %v169_v29 = vadd.f32 %v168_v19, %v167_v13  ;;  %v175_v30 = vrot.slane %v174_v24, 4 }
  0x1b   : > { %v234_v31 = vadd.f32 %v233_v23, %v232_v20  ;;  %v240_v32 = vrot.slane %v239_v25, 4  ;;  %v182_v33 = vrot.slane %v181_v26, 4  ;;  %v246_v34 = vsel %vm159_vm1, %v150_v22, 0.0 }
  0x1c   : > { %v163_v35 = vrot.slane %v162_v27, 2  ;;  %v228_v36 = vrot.slane %v227_v28, 2  ;;  %v170_v37 = vrot.slane %v169_v29, 2  ;;  %2116 = vmatmul.mubr.msk.f32.gmra.mrb[2].mxu1 %vm159_vm1, %v146_v14  ;;  %v176_v38 = vadd.f32 %v175_v30, %v174_v24  ;;  %v157_v30 = vld [vmem:[%s2663_s3 + $0x70] sm:$0xff] }
  0x1d   : > { %v235_v39 = vrot.slane %v234_v31, 2  ;;  %2118 = vmatprep.mubr.msk.f32.mxu1 %vm159_vm1, %v147_v15  ;;  %v241_v40 = vadd.f32 %v240_v32, %v239_v25  ;;  %v183_v41 = vadd.f32 %v182_v33, %v181_v26  ;;  %v247_v42 = vrot.slane %v246_v34, 4  ;;  %v153_v15 = vld [vmem:[%s2663_s3 + $0x50] sm:$0xff]  ;;  %v155_v25 = vld [vmem:[%s2663_s3 + $0x60] sm:$0xff] }
  0x1e   : > { %v164_v43 = vadd.f32 %v163_v35, %v162_v27  ;;  %v229_v44 = vadd.f32 %v228_v36, %v227_v28  ;;  %v171_v45 = vadd.f32 %v170_v37, %v169_v29  ;;  %v177_v46 = vrot.slane %v176_v38, 2 }
  0x1f   : > { %v236_v47 = vadd.f32 %v235_v39, %v234_v31  ;;  %v242_v48 = vrot.slane %v241_v40, 2  ;;  %v184_v49 = vrot.slane %v183_v41, 2  ;;  %v248_v50 = vadd.f32 %v247_v42, %v246_v34  ;;  %v158_v39 = vld [vmem:[%s2663_s3 + $0x78] sm:$0xff] }
  0x20   : > { %v165_v51 = vrot.slane %v164_v43, 1  ;;  %v230_v52 = vrot.slane %v229_v44, 1  ;;  %v172_v53 = vrot.slane %v171_v45, 1  ;;  %v178_v54 = vadd.f32 %v177_v46, %v176_v38  ;;  %2119 = vmatmul.mubr.msk.f32.gmra.mrb[4].mxu1 %vm159_vm1, %v148_v16  ;;  %v154_v16 = vld [vmem:[%s2663_s3 + $0x58] sm:$0xff]  ;;  %v156_v38 = vld [vmem:[%s2663_s3 + $0x68] sm:$0xff] }
  0x21   : > { %v237_v55 = vrot.slane %v236_v47, 1  ;;  %v243_v56 = vadd.f32 %v242_v48, %v241_v40  ;;  %v185_v57 = vadd.f32 %v184_v49, %v183_v41  ;;  %2121 = vmatprep.mubr.msk.f32.mxu1 %vm159_vm1, %v149_v21  ;;  %v249_v58 = vrot.slane %v248_v50, 2 }
  0x22   : > { %v166_v59 = vadd.f32 %v165_v51, %v164_v43  ;;  %v231_v60 = vadd.f32 %v230_v52, %v229_v44  ;;  %v173_v61 = vadd.f32 %v172_v53, %v171_v45  ;;  %v179_v62 = vrot.slane %v178_v54, 1 }
  0x23   : > { %v238_v63 = vadd.f32 %v237_v55, %v236_v47  ;;  %v244_v0 = vrot.slane %v243_v56, 1  ;;  %v186_v1 = vrot.slane %v185_v57, 1  ;;  %v250_v2 = vadd.f32 %v249_v58, %v248_v50 }
  0x24   : > { %v217_v6 = vmul.f32 0.125, %v166_v59  ;;  %v281_v8 = vmul.f32 0.125, %v231_v60  ;;  %v218_v9 = vmul.f32 0.125, %v173_v61  ;;  %v180_v10 = vadd.f32 %v179_v62, %v178_v54  ;;  %2122 = vmatmul.mubr.msk.f32.gmra.mrb[6].mxu1 %vm159_vm1, %v150_v22 }
  0x25   : > { %v282_v11 = vmul.f32 0.125, %v238_v63  ;;  %v245_v12 = vadd.f32 %v244_v0, %v243_v56  ;;  %v187_v13 = vadd.f32 %v186_v1, %v185_v57  ;;  %v251_v14 = vrot.slane %v250_v2, 1  ;;  %2124 = vmatprep.mubr.msk.f32.mxu1 %vm159_vm1, %v151_v4 }
  0x26   : > { %v294_v17 = vadd.f32 %v281_v8, %v217_v6  ;;  %v219_v18 = vmul.f32 0.125, %v180_v10  ;;  %v188_v19 = vsel %vm159_vm1, %v151_v4, 0.0  ;;  %v253_v20 = vsel %vm159_vm1, %v152_v5, 0.0 }
  0x27   : > { %v295_v21 = vadd.f32 %v282_v11, %v218_v9  ;;  %v283_v23 = vmul.f32 0.125, %v245_v12  ;;  %v220_v24 = vmul.f32 0.125, %v187_v13  ;;  %v252_v22 = vadd.f32 %v251_v14, %v250_v2 }
  0x28   : > { %v189_v26 = vrot.slane %v188_v19, 4  ;;  %v254_v27 = vrot.slane %v253_v20, 4  ;;  %2125 = vmatmul.mubr.msk.f32.gmra.mrb[8].mxu1 %vm159_vm1, %v152_v5  ;;  %v195_v28 = vsel %vm159_vm1, %v153_v15, 0.0  ;;  %v260_v29 = vsel %vm159_vm1, %v154_v16, 0.0 }
  0x29   : > { %v2702_v31 = vsel %vm310_vm2, %v295_v21, %v294_v17  ;;  %v2704_v32 = vadd.f32 %v283_v23, %v219_v18  ;;  %v284_v33 = vmul.f32 0.125, %v252_v22  ;;  %v196_v34 = vrot.slane %v195_v28, 4  ;;  %2127 = vmatprep.mubr.msk.f32.mxu1 %vm159_vm1, %v153_v15 }
  0x2a   : > { %v190_v35 = vadd.f32 %v189_v26, %v188_v19  ;;  %v255_v36 = vadd.f32 %v254_v27, %v253_v20  ;;  %v261_v37 = vrot.slane %v260_v29, 4  ;;  %v202_v40 = vsel %vm159_vm1, %v155_v25, 0.0 }
  0x2b   : > { %v297_v41 = vadd.f32 %v284_v33, %v220_v24  ;;  %v197_v42 = vadd.f32 %v196_v34, %v195_v28  ;;  %v203_v43 = vrot.slane %v202_v40, 4  ;;  %v209_v44 = vsel %vm159_vm1, %v157_v30, 0.0 }
  0x2c   : > { %v191_v45 = vrot.slane %v190_v35, 2  ;;  %v256_v46 = vrot.slane %v255_v36, 2  ;;  %v262_v47 = vadd.f32 %v261_v37, %v260_v29  ;;  %2128 = vmatmul.mubr.msk.f32.gmra.mrb[10].mxu1 %vm159_vm1, %v154_v16  ;;  %v210_v48 = vrot.slane %v209_v44, 4 }
  0x2d   : > { %v198_v49 = vrot.slane %v197_v42, 2  ;;  %v204_v50 = vadd.f32 %v203_v43, %v202_v40  ;;  %v267_v51 = vsel %vm159_vm1, %v156_v38, 0.0  ;;  %v274_v52 = vsel %vm159_vm1, %v158_v39, 0.0  ;;  %2130 = vmatprep.mubr.msk.f32.mxu1 %vm159_vm1, %v155_v25 }
  0x2e   : > { %v192_v53 = vadd.f32 %v191_v45, %v190_v35  ;;  %v257_v54 = vadd.f32 %v256_v46, %v255_v36  ;;  %v263_v55 = vrot.slane %v262_v47, 2  ;;  %v211_v56 = vadd.f32 %v210_v48, %v209_v44  ;;  %v860_v44 = vld [vmem:[%s3407_s1 + $0x188] sm:$0xff]  ;;  %v861_v46 = vld [vmem:[%s3407_s1 + $0x190] sm:$0xff] }
  0x2f   : > { %v199_v57 = vadd.f32 %v198_v49, %v197_v42  ;;  %v205_v58 = vrot.slane %v204_v50, 2  ;;  %v268_v59 = vrot.slane %v267_v51, 4  ;;  %v275_v60 = vrot.slane %v274_v52, 4  ;;  %v863_v49 = vld [vmem:[%s3407_s1 + $0x1a0] sm:$0xff] }
  0x30   : > { %v193_v61 = vrot.slane %v192_v53, 1  ;;  %v258_v62 = vrot.slane %v257_v54, 1  ;;  %v264_v63 = vadd.f32 %v263_v55, %v262_v47  ;;  %v212_v0 = vrot.slane %v211_v56, 2  ;;  %2131 = vmatmul.mubr.msk.f32.gmra.mrb[12].mxu1 %vm159_vm1, %v156_v38  ;;  %v862_v47 = vld [vmem:[%s3407_s1 + $0x198] sm:$0xff]  ;;  %v867_v55 = vld [vmem:[%s3407_s1 + $0x1c0] sm:$0xff] }
  0x31   : > { %v200_v1 = vrot.slane %v199_v57, 1  ;;  %v206_v2 = vadd.f32 %v205_v58, %v204_v50  ;;  %v269_v4 = vadd.f32 %v268_v59, %v267_v51  ;;  %v276_v5 = vadd.f32 %v275_v60, %v274_v52  ;;  %2133 = vmatprep.mubr.msk.f32.mxu1 %vm159_vm1, %v157_v30  ;;  %v864_v50 = vld [vmem:[%s3407_s1 + $0x1a8] sm:$0xff]  ;;  %v865_v52 = vld [vmem:[%s3407_s1 + $0x1b0] sm:$0xff]  ;;  %v870_v59 = vld [vmem:[%s3407_s1 + $0x1d8] sm:$0xff] }
  0x32   : > { %v194_v6 = vadd.f32 %v193_v61, %v192_v53  ;;  %v259_v8 = vadd.f32 %v258_v62, %v257_v54  ;;  %v265_v9 = vrot.slane %v264_v63, 1  ;;  %v213_v10 = vadd.f32 %v212_v0, %v211_v56  ;;  %v866_v53 = vld [vmem:[%s3407_s1 + $0x1b8] sm:$0xff]  ;;  %v868_v56 = vld [vmem:[%s3407_s1 + $0x1c8] sm:$0xff]  ;;  %v869_v58 = vld [vmem:[%s3407_s1 + $0x1d0] sm:$0xff] }
  0x33   : > { %v201_v11 = vadd.f32 %v200_v1, %v199_v57  ;;  %v207_v12 = vrot.slane %v206_v2, 1  ;;  %v270_v13 = vrot.slane %v269_v4, 2  ;;  %v277_v14 = vrot.slane %v276_v5, 2  ;;  %v871_v61 = vld [vmem:[%s3407_s1 + $0x1e0] sm:$0xff]  ;;  %v872_v62 = vld [vmem:[%s3407_s1 + $0x1e8] sm:$0xff] }
  0x34   : > { %v221_v15 = vmul.f32 0.125, %v194_v6  ;;  %v285_v16 = vmul.f32 0.125, %v259_v8  ;;  %v266_v17 = vadd.f32 %v265_v9, %v264_v63  ;;  %v214_v18 = vrot.slane %v213_v10, 1  ;;  %2134 = vmatmul.mubr.msk.f32.gmra.mrb[14].mxu1 %vm159_vm1, %v158_v39  ;;  %v876_v0 = vld [vmem:[%s3407_s1 + $0x280] sm:$0xff]  ;;  %v877_v1 = vld [vmem:[%s3407_s1 + $0x288] sm:$0xff]  ;;  %v878_v8 = vld [vmem:[%s3407_s1 + $0x290] sm:$0xff] }
  0x35   : > { %v222_v19 = vmul.f32 0.125, %v201_v11  ;;  %v208_v20 = vadd.f32 %v207_v12, %v206_v2  ;;  %v271_v21 = vadd.f32 %v270_v13, %v269_v4  ;;  %v278_v23 = vadd.f32 %v277_v14, %v276_v5  ;;  %v873_v4 = vld [vmem:[%s3407_s1 + $0x1f0] sm:$0xff]  ;;  %v874_v5 = vld [vmem:[%s3407_s1 + $0x1f8] sm:$0xff]  ;;  %v880_v11 = vld [vmem:[%s3407_s1 + $0x2a0] sm:$0xff] }
  0x36   : > { %v298_v24 = vadd.f32 %v285_v16, %v221_v15  ;;  %v286_v22 = vmul.f32 0.125, %v266_v17  ;;  %v215_v25 = vadd.f32 %v214_v18, %v213_v10  ;;  %v313_v26 = vsel %vm312_vm3, %v2704_v32, %v2702_v31  ;;  %v879_v9 = vld [vmem:[%s3407_s1 + $0x298] sm:$0xff]  ;;  %v881_v12 = vld [vmem:[%s3407_s1 + $0x2a8] sm:$0xff]  ;;  %v882_v14 = vld [vmem:[%s3407_s1 + $0x2b0] sm:$0xff] }
  0x37   : > { %v272_v27 = vrot.slane %v271_v21, 1  ;;  %v279_v28 = vrot.slane %v278_v23, 1  ;;  %v315_v29 = vsel %vm314_vm4, %v297_v41, %v313_v26  ;;  %v223_v33 = vmul.f32 0.125, %v208_v20  ;;  %v859_v41 = vld [vmem:[%s3407_s1 + $0x180] sm:$0xff]  ;;  %v883_v15 = vld [vmem:[%s3407_s1 + $0x2b8] sm:$0xff]  ;;  %v885_v18 = vld [vmem:[%s3407_s1 + $0x2c8] sm:$0xff] }
  0x38   : > { %v299_v30 = vadd.f32 %v286_v22, %v222_v19  ;;  %v224_v34 = vmul.f32 0.125, %v215_v25  ;;  %v317_v37 = vsel %vm316_vm5, %v298_v24, %v315_v29  ;;  %v2398_v45 = vpack.c.bf16 %v860_v44, %v859_v41  ;;  %v884_v17 = vld [vmem:[%s3407_s1 + $0x2c0] sm:$0xff]  ;;  %v886_v20 = vld [vmem:[%s3407_s1 + $0x2d0] sm:$0xff]  ;;  %v889_v22 = vld [vmem:[%s3407_s1 + $0x2e8] sm:$0xff] }
  0x39   : > { %v273_v35 = vadd.f32 %v272_v27, %v271_v21  ;;  %v280_v36 = vadd.f32 %v279_v28, %v278_v23  ;;  %v2402_v48 = vpack.c.bf16 %v862_v47, %v861_v46  ;;  %v2406_v51 = vpack.c.bf16 %v864_v50, %v863_v49  ;;  %v887_v21 = vld [vmem:[%s3407_s1 + $0x2d8] sm:$0xff]  ;;  %v888_v24 = vld [vmem:[%s3407_s1 + $0x2e0] sm:$0xff]  ;;  %v890_v26 = vld [vmem:[%s3407_s1 + $0x2f0] sm:$0xff] }
  0x3a   : > { %v319_v40 = vsel %vm318_vm6, %v299_v30, %v317_v37  ;;  %2399 = vmatprep.subr.bf16.mxu1 %v2398_v45  ;;  %v2410_v54 = vpack.c.bf16 %v866_v53, %v865_v52  ;;  %v2414_v57 = vpack.c.bf16 %v868_v56, %v867_v55  ;;  %v2418_v60 = vpack.c.bf16 %v870_v59, %v869_v58  ;;  %v891_v27 = vld [vmem:[%s3407_s1 + $0x2f8] sm:$0xff]  ;;  %v1949_v41 = vld [vmem:[%s3407_s1 + $0x80] ss:$0 sm:$0xff] }
  0x3b   : > { %v287_v38 = vmul.f32 0.125, %v273_v35  ;;  %v288_v39 = vmul.f32 0.125, %v280_v36  ;;  %2401 = vmatpush3.bf16.msra.mxu1 %v2398_v45  ;;  %v2422_v63 = vpack.c.bf16 %v872_v62, %v871_v61  ;;  %v2375_v2 = vpack.c.bf16 %v877_v1, %v876_v0 }
  0x3c   : > { %2403 = vmatprep.subr.bf16.mxu1 %v2402_v48  ;;  %v2426_v6 = vpack.c.bf16 %v874_v5, %v873_v4  ;;  %v2378_v10 = vpack.c.bf16 %v879_v9, %v878_v8  ;;  %v2381_v13 = vpack.c.bf16 %v881_v12, %v880_v11  ;;  %v2384_v16 = vpack.c.bf16 %v883_v15, %v882_v14 }
  0x3d   : > { %v300_v42 = vadd.f32 %v287_v38, %v223_v33  ;;  %v301_v43 = vadd.f32 %v288_v39, %v224_v34  ;;  %v2387_v19 = vpack.c.bf16 %v885_v18, %v884_v17  ;;  %v2390_v23 = vpack.c.bf16 %v887_v21, %v886_v20 }
  0x3e   : > { %v2393_v25 = vpack.c.bf16 %v889_v22, %v888_v24  ;;  %v2396_v28 = vpack.c.bf16 %v891_v27, %v890_v26  ;;  %v2598_v44 = vmov 1966171168   ;;  %v646_v46 = vlaneseq }
  0x3f   : > { %v321_v31 = vsel %vm320_vm7, %v300_v42, %v319_v40  ;;  %2405 = vmatpush3.bf16.msra.mxu1 %v2402_v48  ;;  %v644_v45 = vunpack.c.l.s4 %v2598_v44 }
  0x40   : > { %v323_v32 = vsel %vm322_vm8, %v301_v43, %v321_v31  ;;  %2407 = vmatprep.subr.bf16.mxu1 %v2406_v51  ;;  %v647_v52 = vshrl.u32 %v646_v46, 7 }
  0x41   : > { %2106 = vmatmul.mubr.msk.f32.vlgmr.msra.gmra.mrb[0].mxu0 %vm159_vm1, %v323_v32 }
  0x42   : > { %2168 = vmatprep.mubr.msk.f32.mxu0 %vm2596_vm0, %v2597_v7  ;;  %2376 = vmatpush3.bf16.msra.mxu0 %v2375_v2  ;;  %v2855_v62 = vsub.s32 0, %v647_v52 }
  0x43   : > { %2409 = vmatpush3.bf16.msra.mxu1 %v2406_v51  ;;  %2377 = vmatprep.subr.bf16.mxu0 %v2595_v3  ;;  %v645_v51 = vunpack.c.0.s8 %v644_v45 }
  0x44   : > { %2411 = vmatprep.subr.bf16.mxu1 %v2410_v54 }
  0x45   : > { %v2853_v61 = vsub.s32 %v645_v51, %v647_v52 }
  0x46   : > { %2379 = vmatpush3.bf16.msra.mxu0 %v2378_v10 }
  0x47   : > { %2413 = vmatpush3.bf16.msra.mxu1 %v2410_v54  ;;  %2380 = vmatprep.subr.bf16.mxu0 %v2595_v3 }
  0x48   : > { %2415 = vmatprep.subr.bf16.mxu1 %v2414_v57 }
  0x4a   : > { %2382 = vmatpush3.bf16.msra.mxu0 %v2381_v13 }
  0x4b   : > { %2417 = vmatpush3.bf16.msra.mxu1 %v2414_v57  ;;  %2383 = vmatprep.subr.bf16.mxu0 %v2595_v3 }
  0x4c   : > { %2419 = vmatprep.subr.bf16.mxu1 %v2418_v60 }
  0x4e   : > { %2385 = vmatpush3.bf16.msra.mxu0 %v2384_v16 }
  0x4f   : > { %2421 = vmatpush3.bf16.msra.mxu1 %v2418_v60  ;;  %2386 = vmatprep.subr.bf16.mxu0 %v2595_v3 }
  0x50   : > { %2423 = vmatprep.subr.bf16.mxu1 %v2422_v63 }
  0x52   : > { %2388 = vmatpush3.bf16.msra.mxu0 %v2387_v19 }
  0x53   : > { %2425 = vmatpush3.bf16.msra.mxu1 %v2422_v63  ;;  %2389 = vmatprep.subr.bf16.mxu0 %v2595_v3 }
  0x54   : > { %2427 = vmatprep.subr.bf16.mxu1 %v2426_v6 }
  0x56   : > { %2391 = vmatpush3.bf16.msra.mxu0 %v2390_v23 }
  0x57   : > { %2429 = vmatpush3.bf16.msra.mxu1 %v2426_v6  ;;  %2392 = vmatprep.subr.bf16.mxu0 %v2595_v3 }
  0x5a   : > { %2394 = vmatpush3.bf16.msra.mxu0 %v2393_v25 }
  0x5b   : > { %2395 = vmatprep.subr.bf16.mxu0 %v2595_v3 }
  0x5e   : > { %2397 = vmatpush3.bf16.msra.mxu0 %v2396_v28 }
  0xeb   : > { %v2114_v29 = vpop.f32.mrb[0].mxu1 }
  0xec   : > { %v510_v30 = vpop.f32.mrb[1].mxu1  ;;  %v2835_v49 = vadd.f32 %v2114_v29, %v1949_v41 }
  0xed   : > { %v2837_v50 = vadd.f32 %v1949_v41, %v510_v30 }
  0xee   : > { %v610_v56 = vmul.f32 0.1, %v2835_v49 }
  0xef   : > { %v2117_v33 = vpop.f32.mrb[2].mxu1  ;;  %v609_v57 = vmul.f32 0.1, %v2837_v50 }
  0xf0   : > { %v520_v34 = vpop.f32.mrb[3].mxu1  ;;  %v2839_v53 = vadd.f32 %v2117_v33, %v1949_v41  ;;  %v626_v9 = vmax.f32 %v2835_v49, %v610_v56 }
  0xf1   : > { %v2841_v54 = vadd.f32 %v1949_v41, %v520_v34  ;;  %v625_v10 = vmax.f32 %v2837_v50, %v609_v57 }
  0xf2   : > { %v612_v63 = vmul.f32 0.1, %v2839_v53 }
  0xf3   : > { %v2120_v35 = vpop.f32.mrb[4].mxu1  ;;  %v611_v4 = vmul.f32 0.1, %v2841_v54 }
  0xf4   : > { %v530_v36 = vpop.f32.mrb[5].mxu1  ;;  %v2843_v55 = vadd.f32 %v2120_v35, %v1949_v41  ;;  %v628_v17 = vmax.f32 %v2839_v53, %v612_v63 }
  0xf5   : > { %v2847_v58 = vadd.f32 %v1949_v41, %v530_v36  ;;  %v627_v21 = vmax.f32 %v2841_v54, %v611_v4 }
  0xf6   : > { %v614_v5 = vmul.f32 0.1, %v2843_v55 }
  0xf7   : > { %v2123_v37 = vpop.f32.mrb[6].mxu1  ;;  %v613_v11 = vmul.f32 0.1, %v2847_v58 }
  0xf8   : > { %v540_v38 = vpop.f32.mrb[7].mxu1  ;;  %v2849_v59 = vadd.f32 %v2123_v37, %v1949_v41  ;;  %v630_v23 = vmax.f32 %v2843_v55, %v614_v5 }
  0xf9   : > { %v2851_v60 = vadd.f32 %v1949_v41, %v540_v38  ;;  %v629_v26 = vmax.f32 %v2847_v58, %v613_v11 }
  0xfa   : > { %v2872_v12 = vmul.f32 0.1, %v2849_v59 }
  0xfb   : > { %v2126_v39 = vpop.f32.mrb[8].mxu1  ;;  %v2875_v13 = vmul.f32 0.1, %v2851_v60 }
  0xfc   : > { %v550_v40 = vpop.f32.mrb[9].mxu1  ;;  %v2858_v0 = vadd.f32 %v2126_v39, %v1949_v41  ;;  %v632_v27 = vmax.f32 %v2849_v59, %v2872_v12 }
  0xfd   : > { %v2860_v1 = vadd.f32 %v1949_v41, %v550_v40  ;;  %v631_v33 = vmax.f32 %v2851_v60, %v2875_v13 }
  0xfe   : > { %v2885_v18 = vmul.f32 0.1, %v2858_v0 }
  0xff   : > { %v2129_v42 = vpop.f32.mrb[10].mxu1  ;;  %v2888_v19 = vmul.f32 0.1, %v2860_v1 }
 0x100   : > { %v560_v43 = vpop.f32.mrb[11].mxu1  ;;  %v2862_v2 = vadd.f32 %v2129_v42, %v1949_v41  ;;  %v634_v37 = vmax.f32 %v2858_v0, %v2885_v18 }
 0x101   : > { %v2866_v6 = vadd.f32 %v1949_v41, %v560_v43  ;;  %v633_v42 = vmax.f32 %v2860_v1, %v2888_v19 }
 0x102   : > { %v2891_v20 = vmul.f32 0.1, %v2862_v2 }
 0x103   : > { %v2132_v31 = vpop.f32.mrb[12].mxu1  ;;  %v2896_v24 = vmul.f32 0.1, %v2866_v6 }
 0x104   : > { %v570_v32 = vpop.f32.mrb[13].mxu1  ;;  %v606_v8 = vadd.f32 %v2132_v31, %v1949_v41  ;;  %v636_v43 = vmax.f32 %v2862_v2, %v2891_v20 }
 0x105   : > { %v2877_v14 = vadd.f32 %v1949_v41, %v570_v32  ;;  %v635_v31 = vmax.f32 %v2866_v6, %v2896_v24 }
 0x106   : > { %v622_v25 = vmul.f32 0.1, %v606_v8 }
 0x107   : > { %v2135_v47 = vpop.f32.mrb[14].mxu1  ;;  %v2905_v34 = vmul.f32 0.1, %v2877_v14 }
 0x108   : > { %v580_v48 = vpop.f32.mrb[15].mxu1  ;;  %v2879_v15 = vadd.f32 %v2135_v47, %v1949_v41  ;;  %v638_v32 = vmax.f32 %v606_v8, %v622_v25 }
 0x109   : > { %v2881_v16 = vadd.f32 %v1949_v41, %v580_v48  ;;  %v637_v48 = vmax.f32 %v2877_v14, %v2905_v34 }
 0x10a   : > { %v624_v35 = vmul.f32 0.1, %v2879_v15 }
 0x10b   : > { %v623_v36 = vmul.f32 0.1, %v2881_v16 }
 0x10c   : > { %v640_v49 = vmax.f32 %v2879_v15, %v624_v35 }
 0x10d   : > { %v639_v50 = vmax.f32 %v2881_v16, %v623_v36 }
 0x114   : > { %v392_v22 = vpop.f32.mrb[0].mxu0 }
 0x115   : > { %v642_v28 = vcombine.high %v392_v22, %v392_v22  ;;  %v649_v29 = vrot.slane %v392_v22, %v2853_v61  ;;  %v2107_v30 = vpop.f32.mrb[1].mxu0 }
 0x117   : > { %v656_v38 = vrot.slane %v642_v28, %v2853_v61  ;;  %v657_v39 = vcombine.high %v649_v29, %v649_v29  ;;  %v665_v40 = vrot.slane %v649_v29, %v2853_v61 }
 0x119   : > { %v658_v41 = vcombine.high %v656_v38, %v656_v38  ;;  %v672_v44 = vrot.slane %v656_v38, %v2853_v61  ;;  %v2921_v45 = vrot.slane %v657_v39, %v2853_v61  ;;  %v687_v46 = vcombine.high %v665_v40, %v665_v40 }
 0x11a   : > { %v694_v47 = vrot.slane %v665_v40, %v2855_v62 }
 0x11b   : > { %v2929_v51 = vrot.slane %v658_v41, %v2853_v61  ;;  %v688_v52 = vcombine.high %v672_v44, %v672_v44  ;;  %v689_v53 = vcombine.high %v2921_v45, %v2921_v45  ;;  %v698_v54 = vrot.slane %v2921_v45, %v2855_v62 }
 0x11c   : > { %v732_v55 = vadd.f32 %v694_v47, %v626_v9  ;;  %v731_v56 = vadd.f32 %v694_v47, %v625_v10  ;;  %v702_v57 = vrot.slane %v687_v46, %v2855_v62  ;;  %v2937_v58 = vrot.slane %v672_v44, %v2855_v62 }
 0x11d   : > { %v2940_v63 = vrot.slane %v688_v52, %v2855_v62  ;;  %v690_v4 = vcombine.high %v2929_v51, %v2929_v51  ;;  %v733_v5 = vadd.f32 %v698_v54, %v627_v21  ;;  %v734_v8 = vadd.f32 %v698_v54, %v628_v17 }
 0x11e   : > { %v803_v11 = vrot.slane %v732_v55, 4  ;;  %v747_v15 = vrot.slane %v731_v56, 4  ;;  %2203 = vmatprep.mubr.f32.mxu1 %v731_v56  ;;  %v735_v16 = vadd.f32 %v702_v57, %v629_v26  ;;  %v736_v22 = vadd.f32 %v702_v57, %v630_v23 }
 0x11f   : > { %v2945_v9 = vadd.f32 %v2940_v63, %v638_v32  ;;  %v722_v10 = vrot.slane %v690_v4, %v2855_v62  ;;  %2204 = vmatmul.mubr.f32.vlgmr.msra.gmra.mrb[16].mxu1 %v732_v55  ;;  %v753_v25 = vrot.slane %v733_v5, 4  ;;  %v809_v28 = vrot.slane %v734_v8, 4 }
 0x120   : > { %v804_v29 = vadd.f32 %v803_v11, %v732_v55  ;;  %v748_v30 = vadd.f32 %v747_v15, %v731_v56  ;;  %2206 = vmatprep.mubr.f32.mxu1 %v733_v5  ;;  %v759_v35 = vrot.slane %v735_v16, 4  ;;  %v815_v36 = vrot.slane %v736_v22, 4 }
 0x121   : > { %v839_v17 = vrot.slane %v2945_v9, 4  ;;  %v2949_v21 = vadd.f32 %v722_v10, %v640_v49  ;;  %v2951_v38 = vadd.f32 %v722_v10, %v639_v50  ;;  %v754_v23 = vadd.f32 %v753_v25, %v733_v5 }
 0x122   : > { %v805_v26 = vrot.slane %v804_v29, 2  ;;  %v749_v39 = vrot.slane %v748_v30, 2  ;;  %v810_v40 = vadd.f32 %v809_v28, %v734_v8  ;;  %v760_v32 = vadd.f32 %v759_v35, %v735_v16 }
 0x123   : > { %v840_v41 = vadd.f32 %v839_v17, %v2945_v9  ;;  %v845_v44 = vrot.slane %v2949_v21, 4  ;;  %v789_v46 = vrot.slane %v2951_v38, 4  ;;  %v755_v47 = vrot.slane %v754_v23, 2  ;;  %2207 = vmatmul.mubr.f32.gmra.mrb[18].mxu1 %v734_v8 }
 0x124   : > { %v806_v52 = vadd.f32 %v805_v26, %v804_v29  ;;  %v750_v54 = vadd.f32 %v749_v39, %v748_v30  ;;  %v811_v55 = vrot.slane %v810_v40, 2  ;;  %v761_v49 = vrot.slane %v760_v32, 2  ;;  %2209 = vmatprep.mubr.f32.mxu1 %v735_v16 }
 0x125   : > { %v841_v50 = vrot.slane %v840_v41, 2  ;;  %v846_v56 = vadd.f32 %v845_v44, %v2949_v21  ;;  %v790_v57 = vadd.f32 %v789_v46, %v2951_v38  ;;  %v756_v4 = vadd.f32 %v755_v47, %v754_v23 }
 0x126   : > { %v807_v5 = vrot.slane %v806_v52, 1  ;;  %v751_v11 = vrot.slane %v750_v54, 1  ;;  %v812_v15 = vadd.f32 %v811_v55, %v810_v40  ;;  %v762_v10 = vadd.f32 %v761_v49, %v760_v32 }
 0x127   : > { %v2958_v25 = vadd.f32 %v841_v50, %v840_v41  ;;  %v847_v28 = vrot.slane %v846_v56, 2  ;;  %v791_v35 = vrot.slane %v790_v57, 2  ;;  %v757_v8 = vrot.slane %v756_v4, 1  ;;  %2210 = vmatmul.mubr.f32.gmra.mrb[20].mxu1 %v736_v22 }
 0x128   : > { %v808_v29 = vadd.f32 %v807_v5, %v806_v52  ;;  %v752_v30 = vadd.f32 %v751_v11, %v750_v54  ;;  %v813_v17 = vrot.slane %v812_v15, 1  ;;  %v763_v16 = vrot.slane %v762_v10, 1 }
 0x129   : > { %v843_v26 = vrot.slane %v2958_v25, 1  ;;  %v2961_v39 = vadd.f32 %v847_v28, %v846_v56  ;;  %v2963_v44 = vadd.f32 %v791_v35, %v790_v57  ;;  %v758_v23 = vadd.f32 %v757_v8, %v756_v4 }
 0x12a   : > { %v851_v46 = vmul.f32 0.125, %v808_v29  ;;  %v795_v40 = vmul.f32 0.125, %v752_v30  ;;  %v814_v32 = vadd.f32 %v813_v17, %v812_v15  ;;  %v764_v41 = vadd.f32 %v763_v16, %v762_v10 }
 0x12b   : > { %v796_v47 = vmul.f32 0.125, %v758_v23  ;;  %v816_v55 = vadd.f32 %v815_v36, %v736_v22  ;;  %v706_v52 = vrot.slane %v689_v53, %v2855_v62  ;;  %v739_v54 = vadd.f32 %v2937_v58, %v633_v42 }
 0x12c   : > { %v2973_v49 = vadd.f32 %v851_v46, %v795_v40  ;;  %v852_v50 = vmul.f32 0.125, %v814_v32  ;;  %v797_v56 = vmul.f32 0.125, %v764_v41  ;;  %v740_v57 = vadd.f32 %v2937_v58, %v634_v37 }
 0x12d   : > { %v817_v22 = vrot.slane %v816_v55, 2  ;;  %v737_v45 = vadd.f32 %v706_v52, %v631_v33  ;;  %v738_v1 = vadd.f32 %v706_v52, %v632_v27  ;;  %v771_v19 = vrot.slane %v739_v54, 4 }
 0x12e   : > { %v2985_v42 = vadd.f32 %v852_v50, %v796_v47  ;;  %v827_v53 = vrot.slane %v740_v57, 4  ;;  %v714_v36 = vrot.slane %v2929_v51, %v2855_v62  ;;  %v743_v0 = vadd.f32 %v2940_v63, %v637_v48 }
 0x12f   : > { %v818_v18 = vadd.f32 %v817_v22, %v816_v55  ;;  %v765_v37 = vrot.slane %v737_v45, 4  ;;  %2212 = vmatprep.mubr.f32.mxu1 %v737_v45  ;;  %v821_v60 = vrot.slane %v738_v1, 4  ;;  %v772_v13 = vadd.f32 %v771_v19, %v739_v54 }
 0x130   : > { %2213 = vmatmul.mubr.f32.gmra.mrb[22].mxu1 %v738_v1  ;;  %v828_v59 = vadd.f32 %v827_v53, %v740_v57  ;;  %v741_v12 = vadd.f32 %v714_v36, %v635_v31  ;;  %v742_v27 = vadd.f32 %v714_v36, %v636_v43  ;;  %v783_v33 = vrot.slane %v743_v0, 4 }
 0x131   : > { %v819_v51 = vrot.slane %v818_v18, 1  ;;  %v766_v14 = vadd.f32 %v765_v37, %v737_v45  ;;  %v822_v34 = vadd.f32 %v821_v60, %v738_v1  ;;  %v773_v48 = vrot.slane %v772_v13, 2  ;;  %2215 = vmatprep.mubr.f32.mxu1 %v739_v54 }
 0x132   : > { %v829_v58 = vrot.slane %v828_v59, 2  ;;  %v777_v63 = vrot.slane %v741_v12, 4  ;;  %v833_v4 = vrot.slane %v742_v27, 4  ;;  %v784_v5 = vadd.f32 %v783_v33, %v743_v0 }
 0x133   : > { %v820_v11 = vadd.f32 %v819_v51, %v818_v18  ;;  %v767_v15 = vrot.slane %v766_v14, 2  ;;  %v823_v10 = vrot.slane %v822_v34, 2  ;;  %v774_v28 = vadd.f32 %v773_v48, %v772_v13 }
 0x134   : > { %v830_v6 = vadd.f32 %v829_v58, %v828_v59  ;;  %2216 = vmatmul.mubr.f32.gmra.mrb[24].mxu1 %v740_v57  ;;  %v778_v24 = vadd.f32 %v777_v63, %v741_v12  ;;  %v834_v31 = vadd.f32 %v833_v4, %v742_v27  ;;  %v785_v2 = vrot.slane %v784_v5, 2 }
 0x135   : > { %v853_v20 = vmul.f32 0.125, %v820_v11  ;;  %v768_v43 = vadd.f32 %v767_v15, %v766_v14  ;;  %v824_v35 = vadd.f32 %v823_v10, %v822_v34  ;;  %v775_v8 = vrot.slane %v774_v28, 1  ;;  %2218 = vmatprep.mubr.f32.mxu1 %v741_v12  ;;  %v1436_v10 = vld [vmem:[%s3407_s1 + $0x318] sm:$0xff] }
 0x136   : > { %v831_v29 = vrot.slane %v830_v6, 1  ;;  %v779_v30 = vrot.slane %v778_v24, 2  ;;  %v835_v17 = vrot.slane %v834_v31, 2  ;;  %v786_v16 = vadd.f32 %v785_v2, %v784_v5  ;;  %v1439_v2 = vld [vmem:[%s3407_s1 + $0x330] sm:$0xff] }
 0x137   : > { %v894_v23 = vadd.f32 %v853_v20, %v797_v56  ;;  %v769_v46 = vrot.slane %v768_v43, 1  ;;  %v825_v40 = vrot.slane %v824_v35, 1  ;;  %v776_v32 = vadd.f32 %v775_v8, %v774_v28  ;;  %v1440_v20 = vld [vmem:[%s3407_s1 + $0x338] sm:$0xff]  ;;  %v1442_v8 = vld [vmem:[%s3407_s1 + $0x348] sm:$0xff] }
 0x138   : > { %v832_v41 = vadd.f32 %v831_v29, %v830_v6  ;;  %v780_v47 = vadd.f32 %v779_v30, %v778_v24  ;;  %v836_v55 = vadd.f32 %v835_v17, %v834_v31  ;;  %2219 = vmatmul.mubr.f32.gmra.mrb[26].mxu1 %v742_v27  ;;  %v787_v52 = vrot.slane %v786_v16, 1  ;;  %v1437_v6 = vld [vmem:[%s3407_s1 + $0x320] sm:$0xff]  ;;  %v1438_v24 = vld [vmem:[%s3407_s1 + $0x328] sm:$0xff]  ;;  %v1443_v30 = vld [vmem:[%s3407_s1 + $0x350] sm:$0xff] }
 0x139   : > { %v770_v54 = vadd.f32 %v769_v46, %v768_v43  ;;  %v826_v50 = vadd.f32 %v825_v40, %v824_v35  ;;  %v799_v57 = vmul.f32 0.125, %v776_v32  ;;  %2221 = vmatprep.mubr.f32.mxu1 %v743_v0  ;;  %v793_v22 = vrot.slane %v2963_v44, 1  ;;  %v1441_v35 = vld [vmem:[%s3407_s1 + $0x340] sm:$0xff]  ;;  %v1444_v17 = vld [vmem:[%s3407_s1 + $0x358] sm:$0xff]  ;;  %v1446_v46 = vld [vmem:[%s3407_s1 + $0x368] sm:$0xff] }
 0x13a   : > { %v855_v45 = vmul.f32 0.125, %v832_v41  ;;  %v781_v1 = vrot.slane %v780_v47, 1  ;;  %v837_v19 = vrot.slane %v836_v55, 1  ;;  %v788_v53 = vadd.f32 %v787_v52, %v786_v16  ;;  %v1447_v32 = vld [vmem:[%s3407_s1 + $0x370] sm:$0xff]  ;;  %v1448_v41 = vld [vmem:[%s3407_s1 + $0x378] sm:$0xff]  ;;  %v1534_v52 = vld [vmem:[%s3407_s1 + $0x408] sm:$0xff] }
 0x13b   : > { %v798_v36 = vmul.f32 0.125, %v770_v54  ;;  %v854_v56 = vmul.f32 0.125, %v826_v50  ;;  %v794_v18 = vadd.f32 %v793_v22, %v2963_v44  ;;  %v844_v37 = vadd.f32 %v843_v26, %v2958_v25  ;;  %v1535_v54 = vld [vmem:[%s3407_s1 + $0x410] sm:$0xff] }
 0x13c   : > { %v782_v60 = vadd.f32 %v781_v1, %v780_v47  ;;  %v838_v13 = vadd.f32 %v837_v19, %v836_v55  ;;  %v801_v59 = vmul.f32 0.125, %v788_v53  ;;  %v849_v12 = vrot.slane %v2961_v39, 1  ;;  %2222 = vmatmul.mubr.f32.gmra.mrb[28].mxu1 %v2945_v9  ;;  %v1533_v55 = vld [vmem:[%s3407_s1 + $0x400] sm:$0xff]  ;;  %v1538_v1 = vld [vmem:[%s3407_s1 + $0x428] sm:$0xff]  ;;  %v1539_v53 = vld [vmem:[%s3407_s1 + $0x430] sm:$0xff] }
 0x13d   : > { %v895_v0 = vadd.f32 %v854_v56, %v798_v36  ;;  %v802_v27 = vmul.f32 0.125, %v794_v18  ;;  %v857_v33 = vmul.f32 0.125, %v844_v37  ;;  %v896_v51 = vadd.f32 %v855_v45, %v799_v57  ;;  %2224 = vmatprep.mubr.f32.mxu1 %v2951_v38  ;;  %v1536_v57 = vld [vmem:[%s3407_s1 + $0x418] sm:$0xff]  ;;  %v1537_v45 = vld [vmem:[%s3407_s1 + $0x420] sm:$0xff]  ;;  %v1542_v37 = vld [vmem:[%s3407_s1 + $0x448] sm:$0xff] }
 0x13e   : > { %v800_v14 = vmul.f32 0.125, %v782_v60  ;;  %v856_v34 = vmul.f32 0.125, %v838_v13  ;;  %v850_v44 = vadd.f32 %v849_v12, %v2961_v39  ;;  %v908_v25 = vsel %vm310_vm2, %v2985_v42, %v2973_v49  ;;  %v1433_v49 = vld [vmem:[%s3407_s1 + $0x300] sm:$0xff]  ;;  %v1434_v42 = vld [vmem:[%s3407_s1 + $0x308] sm:$0xff]  ;;  %v1540_v36 = vld [vmem:[%s3407_s1 + $0x438] sm:$0xff] }
 0x13f   : > { %v898_v26 = vadd.f32 %v857_v33, %v801_v59  ;;  %v909_v48 = vsel %vm312_vm3, %v894_v23, %v908_v25  ;;  %v2430_v15 = vpack.c.bf16 %v1434_v42, %v1433_v49  ;;  %v2438_v31 = vpack.c.bf16 %v1438_v24, %v1437_v6  ;;  %v1445_v23 = vld [vmem:[%s3407_s1 + $0x360] sm:$0xff]  ;;  %v1543_v13 = vld [vmem:[%s3407_s1 + $0x450] sm:$0xff]  ;;  %v1544_v59 = vld [vmem:[%s3407_s1 + $0x458] sm:$0xff] }
 0x140   : > { %v858_v58 = vmul.f32 0.125, %v850_v44  ;;  %v897_v63 = vadd.f32 %v856_v34, %v800_v14  ;;  %v910_v9 = vsel %vm314_vm4, %v895_v0, %v909_v48  ;;  %2225 = vmatmul.mubr.f32.gmra.mrb[30].mxu1 %v2949_v21  ;;  %v1435_v21 = vld [vmem:[%s3407_s1 + $0x310] sm:$0xff]  ;;  %v2442_v43 = vpack.c.bf16 %v1440_v20, %v1439_v2  ;;  %v1541_v18 = vld [vmem:[%s3407_s1 + $0x440] sm:$0xff] }
 0x141   : > { %v911_v4 = vsel %vm316_vm5, %v896_v51, %v910_v9  ;;  %2431 = vmatprep.subr.bf16.mxu0 %v2430_v15  ;;  %v2434_v28 = vpack.c.bf16 %v1436_v10, %v1435_v21  ;;  %v2446_v29 = vpack.c.bf16 %v1442_v8, %v1441_v35  ;;  %v2450_v16 = vpack.c.bf16 %v1444_v17, %v1443_v30 }
 0x142   : > { %v899_v38 = vadd.f32 %v858_v58, %v802_v27  ;;  %v912_v5 = vsel %vm318_vm6, %v897_v63, %v911_v4  ;;  %v2454_v40 = vpack.c.bf16 %v1446_v46, %v1445_v23  ;;  %v2458_v47 = vpack.c.bf16 %v1448_v41, %v1447_v32  ;;  %v1950_v58 = vld [vmem:[%s3407_s1 + $0x200] ss:$0 sm:$0xff] }
 0x143   : > { %v913_v39 = vsel %vm320_vm7, %v898_v26, %v912_v5  ;;  %v2462_v50 = vpack.c.bf16 %v1534_v52, %v1533_v55  ;;  %v2466_v22 = vpack.c.bf16 %v1536_v57, %v1535_v54  ;;  %v2470_v19 = vpack.c.bf16 %v1538_v1, %v1537_v45 }
 0x144   : > { %v914_v11 = vsel %vm322_vm8, %v899_v38, %v913_v39  ;;  %v2474_v56 = vpack.c.bf16 %v1540_v36, %v1539_v53  ;;  %v2478_v60 = vpack.c.bf16 %v1542_v37, %v1541_v18  ;;  %v2482_v12 = vpack.c.bf16 %v1544_v59, %v1543_v13 }
 0x145   : > { %2169 = vmatmul.mubr.f32.vlgmr.msra.gmra.mrb[2].mxu0 %v914_v11  ;;  %2463 = vmatprep.subr.bf16.mxu1 %v2462_v50 }
 0x146   : > { %2433 = vmatpush3.bf16.msra.mxu0 %v2430_v15  ;;  %2465 = vmatpush3.bf16.msra.mxu1 %v2462_v50 }
 0x147   : > { %2435 = vmatprep.subr.bf16.mxu0 %v2434_v28  ;;  %2467 = vmatprep.subr.bf16.mxu1 %v2466_v22 }
 0x14a   : > { %2437 = vmatpush3.bf16.msra.mxu0 %v2434_v28  ;;  %2469 = vmatpush3.bf16.msra.mxu1 %v2466_v22 }
 0x14b   : > { %2439 = vmatprep.subr.bf16.mxu0 %v2438_v31  ;;  %2471 = vmatprep.subr.bf16.mxu1 %v2470_v19 }
 0x14e   : > { %2441 = vmatpush3.bf16.msra.mxu0 %v2438_v31  ;;  %2473 = vmatpush3.bf16.msra.mxu1 %v2470_v19 }
 0x14f   : > { %2443 = vmatprep.subr.bf16.mxu0 %v2442_v43  ;;  %2475 = vmatprep.subr.bf16.mxu1 %v2474_v56 }
 0x152   : > { %2445 = vmatpush3.bf16.msra.mxu0 %v2442_v43  ;;  %2477 = vmatpush3.bf16.msra.mxu1 %v2474_v56 }
 0x153   : > { %2447 = vmatprep.subr.bf16.mxu0 %v2446_v29  ;;  %2479 = vmatprep.subr.bf16.mxu1 %v2478_v60 }
 0x156   : > { %2449 = vmatpush3.bf16.msra.mxu0 %v2446_v29  ;;  %2481 = vmatpush3.bf16.msra.mxu1 %v2478_v60 }
 0x157   : > { %2451 = vmatprep.subr.bf16.mxu0 %v2450_v16  ;;  %2483 = vmatprep.subr.bf16.mxu1 %v2482_v12 }
 0x15a   : > { %2453 = vmatpush3.bf16.msra.mxu0 %v2450_v16  ;;  %2485 = vmatpush3.bf16.msra.mxu1 %v2482_v12 }
 0x15b   : > { %2455 = vmatprep.subr.bf16.mxu0 %v2454_v40 }
 0x15e   : > { %2457 = vmatpush3.bf16.msra.mxu0 %v2454_v40 }
 0x15f   : > { %2459 = vmatprep.subr.bf16.mxu0 %v2458_v47 }
 0x162   : > { %2461 = vmatpush3.bf16.msra.mxu0 %v2458_v47 }
 0x163   : > { %2494 = vmatprep.subr.bf16.mxu0 %v2595_v3 }
 0x1f2   : > { %v2205_v0 = vpop.f32.mrb[16].mxu1 }
 0x1f3   : > { %v1052_v27 = vpop.f32.mrb[17].mxu1  ;;  %v3106_v4 = vadd.f32 %v2205_v0, %v1950_v58 }
 0x1f4   : > { %v3108_v38 = vadd.f32 %v1950_v58, %v1052_v27 }
 0x1f5   : > { %v3117_v15 = vmul.f32 0.1, %v3106_v4 }
 0x1f6   : > { %v2208_v33 = vpop.f32.mrb[18].mxu1  ;;  %v1151_v21 = vmul.f32 0.1, %v3108_v38 }
 0x1f7   : > { %v1062_v51 = vpop.f32.mrb[19].mxu1  ;;  %v3110_v5 = vadd.f32 %v2208_v33, %v1950_v58  ;;  %v1168_v17 = vmax.f32 %v3106_v4, %v3117_v15 }
 0x1f8   : > { %v3112_v11 = vadd.f32 %v1950_v58, %v1062_v51  ;;  %v1167_v16 = vmax.f32 %v3108_v38, %v1151_v21 }
 0x1f9   : > { %v3127_v24 = vmul.f32 0.1, %v3110_v5 }
 0x1fa   : > { %v2211_v14 = vpop.f32.mrb[20].mxu1  ;;  %v1153_v43 = vmul.f32 0.1, %v3112_v11 }
 0x1fb   : > { %v1072_v34 = vpop.f32.mrb[21].mxu1  ;;  %v3114_v49 = vadd.f32 %v2211_v14, %v1950_v58  ;;  %v1170_v55 = vmax.f32 %v3110_v5, %v3127_v24 }
 0x1fc   : > { %v3120_v10 = vadd.f32 %v1950_v58, %v1072_v34  ;;  %v1169_v57 = vmax.f32 %v3112_v11, %v1153_v43 }
 0x1fd   : > { %v1156_v35 = vmul.f32 0.1, %v3114_v49 }
 0x1fe   : > { %v1155_v23 = vmul.f32 0.1, %v3120_v10 }
 0x1ff   : > { %v1172_v22 = vmax.f32 %v3114_v49, %v1156_v35 }
 0x200   : > { %v1171_v53 = vmax.f32 %v3120_v10, %v1155_v23 }
 0x203   : > { %v2214_v44 = vpop.f32.mrb[22].mxu1 }
 0x204   : > { %v1082_v25 = vpop.f32.mrb[23].mxu1  ;;  %v3122_v28 = vadd.f32 %v2214_v44, %v1950_v58 }
 0x205   : > { %v3124_v6 = vadd.f32 %v1950_v58, %v1082_v25 }
 0x206   : > { %v1158_v46 = vmul.f32 0.1, %v3122_v28 }
 0x207   : > { %v2217_v26 = vpop.f32.mrb[24].mxu1  ;;  %v1157_v40 = vmul.f32 0.1, %v3124_v6 }
 0x208   : > { %v1092_v48 = vpop.f32.mrb[25].mxu1  ;;  %v3129_v31 = vadd.f32 %v2217_v26, %v1950_v58  ;;  %v1174_v36 = vmax.f32 %v3122_v28, %v1158_v46 }
 0x209   : > { %v3131_v2 = vadd.f32 %v1950_v58, %v1092_v48  ;;  %v1173_v60 = vmax.f32 %v3124_v6, %v1157_v40 }
 0x20a   : > { %v1160_v52 = vmul.f32 0.1, %v3129_v31 }
 0x20b   : > { %v2220_v63 = vpop.f32.mrb[26].mxu1  ;;  %v1159_v54 = vmul.f32 0.1, %v3131_v2 }
 0x20c   : > { %v1102_v9 = vpop.f32.mrb[27].mxu1  ;;  %v3135_v8 = vadd.f32 %v2220_v63, %v1950_v58  ;;  %v1176_v14 = vmax.f32 %v3129_v31, %v1160_v52 }
 0x20d   : > { %v3137_v29 = vadd.f32 %v1950_v58, %v1102_v9  ;;  %v1175_v34 = vmax.f32 %v3131_v2, %v1159_v54 }
 0x20e   : > { %v1162_v45 = vmul.f32 0.1, %v3135_v8 }
 0x20f   : > { %v2223_v39 = vpop.f32.mrb[28].mxu1  ;;  %v1161_v1 = vmul.f32 0.1, %v3137_v29 }
 0x210   : > { %v1112_v42 = vpop.f32.mrb[29].mxu1  ;;  %v3145_v32 = vadd.f32 %v2223_v39, %v1950_v58  ;;  %v1178_v44 = vmax.f32 %v3135_v8, %v1162_v45 }
 0x211   : > { %v3147_v41 = vadd.f32 %v1950_v58, %v1112_v42  ;;  %v1177_v25 = vmax.f32 %v3137_v29, %v1161_v1 }
 0x212   : > { %v3166_v13 = vmul.f32 0.1, %v3145_v32 }
 0x213   : > { %v2226_v20 = vpop.f32.mrb[30].mxu1  ;;  %v3169_v59 = vmul.f32 0.1, %v3147_v41 }
 0x214   : > { %v1122_v30 = vpop.f32.mrb[31].mxu1  ;;  %v3149_v47 = vadd.f32 %v2226_v20, %v1950_v58  ;;  %v1180_v4 = vmax.f32 %v3145_v32, %v3166_v13 }
 0x215   : > { %v3155_v50 = vadd.f32 %v1950_v58, %v1122_v30  ;;  %v1179_v38 = vmax.f32 %v3147_v41, %v3169_v59 }
 0x216   : > { %v3172_v12 = vmul.f32 0.1, %v3149_v47 }
 0x217   : > { %v3177_v51 = vmul.f32 0.1, %v3155_v50 }
 0x218   : > { %v982_v19 = vpop.f32.mrb[2].mxu0  ;;  %v1182_v5 = vmax.f32 %v3149_v47, %v3172_v12 }
 0x219   : > { %v1184_v56 = vcombine.high %v982_v19, %v982_v19  ;;  %v1191_v18 = vrot.slane %v982_v19, %v2853_v61  ;;  %v2170_v37 = vpop.f32.mrb[3].mxu0  ;;  %v1181_v42 = vmax.f32 %v3155_v50, %v3177_v51 }
 0x21b   : > { %v1198_v0 = vrot.slane %v1184_v56, %v2853_v61  ;;  %v1199_v27 = vcombine.high %v1191_v18, %v1191_v18  ;;  %v1207_v33 = vrot.slane %v1191_v18, %v2853_v61 }
 0x21d   : > { %v1200_v26 = vcombine.high %v1198_v0, %v1198_v0  ;;  %v3184_v48 = vrot.slane %v1198_v0, %v2853_v61  ;;  %v1221_v58 = vrot.slane %v1199_v27, %v2853_v61  ;;  %v1229_v63 = vcombine.high %v1207_v33, %v1207_v33 }
 0x21e   : > { %v1236_v9 = vrot.slane %v1207_v33, %v2855_v62 }
 0x21f   : > { %v3195_v39 = vrot.slane %v1200_v26, %v2853_v61  ;;  %v1231_v11 = vcombine.high %v1221_v58, %v1221_v58  ;;  %v1240_v49 = vrot.slane %v1221_v58, %v2855_v62  ;;  %v1244_v15 = vrot.slane %v1229_v63, %v2855_v62 }
 0x220   : > { %v1252_v21 = vrot.slane %v3184_v48, %v2855_v62  ;;  %v1273_v10 = vadd.f32 %v1236_v9, %v1167_v16  ;;  %v1274_v28 = vadd.f32 %v1236_v9, %v1168_v17 }
 0x221   : > { %v1248_v6 = vrot.slane %v1231_v11, %v2855_v62  ;;  %v1256_v24 = vrot.slane %v3195_v39, %v2855_v62  ;;  %v1275_v61 = vadd.f32 %v1240_v49, %v1169_v57  ;;  %v1276_v31 = vadd.f32 %v1240_v49, %v1170_v55 }
 0x222   : > { %v1277_v2 = vadd.f32 %v1244_v15, %v1171_v53  ;;  %v1278_v20 = vadd.f32 %v1244_v15, %v1172_v22  ;;  %v1281_v43 = vadd.f32 %v1252_v21, %v1175_v34  ;;  %v1282_v35 = vadd.f32 %v1252_v21, %v1176_v14 }
 0x223   : > { %v1279_v8 = vadd.f32 %v1248_v6, %v1173_v60  ;;  %v1280_v29 = vadd.f32 %v1248_v6, %v1174_v36  ;;  %v1283_v30 = vadd.f32 %v1256_v24, %v1177_v25  ;;  %v1284_v23 = vadd.f32 %v1256_v24, %v1178_v44 }
 0x224   : > { %v1289_v46 = vrot.slane %v1273_v10, 4  ;;  %v1295_v40 = vrot.slane %v1275_v61, 4  ;;  %v1301_v52 = vrot.slane %v1277_v2, 4  ;;  %v1313_v16 = vrot.slane %v1281_v43, 4 }
 0x225   : > { %v1307_v17 = vrot.slane %v1279_v8, 4  ;;  %v1319_v54 = vrot.slane %v1283_v30, 4  ;;  %v1345_v45 = vrot.slane %v1274_v28, 4  ;;  %v1351_v1 = vrot.slane %v1276_v31, 4 }
 0x226   : > { %v1290_v19 = vadd.f32 %v1289_v46, %v1273_v10  ;;  %v1296_v56 = vadd.f32 %v1295_v40, %v1275_v61  ;;  %v1302_v57 = vadd.f32 %v1301_v52, %v1277_v2  ;;  %v1314_v55 = vadd.f32 %v1313_v16, %v1281_v43 }
 0x227   : > { %v1230_v22 = vcombine.high %v3184_v48, %v3184_v48  ;;  %v1308_v53 = vadd.f32 %v1307_v17, %v1279_v8  ;;  %v1346_v18 = vadd.f32 %v1345_v45, %v1274_v28  ;;  %v1352_v36 = vadd.f32 %v1351_v1, %v1276_v31 }
 0x228   : > { %v1291_v37 = vrot.slane %v1290_v19, 2  ;;  %v1297_v60 = vrot.slane %v1296_v56, 2  ;;  %v1303_v0 = vrot.slane %v1302_v57, 2  ;;  %v3208_v27 = vadd.f32 %v1319_v54, %v1283_v30 }
 0x229   : > { %v1309_v33 = vrot.slane %v1308_v53, 2  ;;  %v1347_v14 = vrot.slane %v1346_v18, 2  ;;  %v1353_v34 = vrot.slane %v1352_v36, 2  ;;  %v1357_v44 = vrot.slane %v1278_v20, 4 }
 0x22a   : > { %v1292_v25 = vadd.f32 %v1291_v37, %v1290_v19  ;;  %v1298_v26 = vadd.f32 %v1297_v60, %v1296_v56  ;;  %v1304_v58 = vadd.f32 %v1303_v0, %v1302_v57  ;;  %v1315_v63 = vrot.slane %v1314_v55, 2 }
 0x22b   : > { %v1310_v9 = vadd.f32 %v1309_v33, %v1308_v53  ;;  %v1348_v11 = vadd.f32 %v1347_v14, %v1346_v18  ;;  %v1354_v49 = vadd.f32 %v1353_v34, %v1352_v36  ;;  %v1358_v48 = vadd.f32 %v1357_v44, %v1278_v20 }
 0x22c   : > { %v1293_v15 = vrot.slane %v1292_v25, 1  ;;  %v1299_v21 = vrot.slane %v1298_v26, 1  ;;  %v1305_v10 = vrot.slane %v1304_v58, 1  ;;  %v1363_v28 = vrot.slane %v1280_v29, 4 }
 0x22d   : > { %v1349_v6 = vrot.slane %v1348_v11, 1  ;;  %v1355_v24 = vrot.slane %v1354_v49, 1  ;;  %v1359_v61 = vrot.slane %v1358_v48, 2  ;;  %v1369_v31 = vrot.slane %v1282_v35, 4 }
 0x22e   : > { %v1294_v2 = vadd.f32 %v1293_v15, %v1292_v25  ;;  %v1300_v43 = vadd.f32 %v1299_v21, %v1298_v26  ;;  %v1306_v8 = vadd.f32 %v1305_v10, %v1304_v58  ;;  %v1364_v30 = vadd.f32 %v1363_v28, %v1280_v29 }
 0x22f   : > { %v1350_v46 = vadd.f32 %v1349_v6, %v1348_v11  ;;  %v1356_v40 = vadd.f32 %v1355_v24, %v1354_v49  ;;  %v1360_v52 = vadd.f32 %v1359_v61, %v1358_v48  ;;  %v1370_v16 = vadd.f32 %v1369_v31, %v1282_v35 }
 0x230   : > { %v1316_v17 = vadd.f32 %v1315_v63, %v1314_v55  ;;  %v1337_v54 = vmul.f32 0.125, %v1294_v2  ;;  %v1338_v45 = vmul.f32 0.125, %v1300_v43  ;;  %v1365_v20 = vrot.slane %v1364_v30, 2 }
 0x231   : > { %v1339_v1 = vmul.f32 0.125, %v1306_v8  ;;  %v1361_v19 = vrot.slane %v1360_v52, 1  ;;  %v1371_v56 = vrot.slane %v1370_v16, 2  ;;  %v1375_v57 = vrot.slane %v1284_v23, 4 }
 0x232   : > { %v1366_v53 = vadd.f32 %v1365_v20, %v1364_v30  ;;  %v1393_v18 = vmul.f32 0.125, %v1350_v46  ;;  %v1260_v36 = vrot.slane %v1230_v22, %v2855_v62  ;;  %v1232_v37 = vcombine.high %v3195_v39, %v3195_v39 }
 0x233   : > { %v1372_v29 = vadd.f32 %v1371_v56, %v1370_v16  ;;  %v1376_v60 = vadd.f32 %v1375_v57, %v1284_v23  ;;  %v1394_v0 = vmul.f32 0.125, %v1356_v40  ;;  %v1311_v33 = vrot.slane %v1310_v9, 1 }
 0x234   : > { %v1362_v35 = vadd.f32 %v1361_v19, %v1360_v52  ;;  %v1286_v55 = vadd.f32 %v1260_v36, %v1180_v4  ;;  %v1285_v14 = vadd.f32 %v1260_v36, %v1179_v38  ;;  %v1264_v34 = vrot.slane %v1232_v37, %v2855_v62 }
 0x235   : > { %v1367_v44 = vrot.slane %v1366_v53, 1  ;;  %v1373_v22 = vrot.slane %v1372_v29, 1  ;;  %v1377_v25 = vrot.slane %v1376_v60, 2  ;;  %v1312_v26 = vadd.f32 %v1311_v33, %v1310_v9 }
 0x236   : > { %v1381_v39 = vrot.slane %v1286_v55, 4  ;;  %v1325_v58 = vrot.slane %v1285_v14, 4  ;;  %v1288_v23 = vadd.f32 %v1264_v34, %v1182_v5  ;;  %v1287_v32 = vadd.f32 %v1264_v34, %v1181_v42 }
 0x237   : > { %v1317_v13 = vrot.slane %v1316_v17, 1  ;;  %v1321_v41 = vrot.slane %v3208_v27, 2  ;;  %v1340_v59 = vmul.f32 0.125, %v1312_v26  ;;  %v1409_v62 = vsel %vm310_vm2, %v1338_v45, %v1337_v54 }
 0x238   : > { %v1382_v4 = vadd.f32 %v1381_v39, %v1286_v55  ;;  %v1326_v38 = vadd.f32 %v1325_v58, %v1285_v14  ;;  %v1387_v63 = vrot.slane %v1288_v23, 4  ;;  %v1331_v9 = vrot.slane %v1287_v32, 4  ;;  %v1545_v39 = vld [vmem:[%s3407_s1 + $0x460] sm:$0xff]  ;;  %v1546_v58 = vld [vmem:[%s3407_s1 + $0x468] sm:$0xff] }
 0x239   : > { %v1395_v11 = vmul.f32 0.125, %v1362_v35  ;;  %v1318_v49 = vadd.f32 %v1317_v13, %v1316_v17  ;;  %v1322_v48 = vadd.f32 %v1321_v41, %v3208_v27  ;;  %v1410_v47 = vsel %vm312_vm3, %v1339_v1, %v1409_v62  ;;  %v1548_v13 = vld [vmem:[%s3407_s1 + $0x478] sm:$0xff]  ;;  %v1635_v62 = vld [vmem:[%s3407_s1 + $0x508] sm:$0xff] }
 0x23a   : > { %v1383_v12 = vrot.slane %v1382_v4, 2  ;;  %v1327_v5 = vrot.slane %v1326_v38, 2  ;;  %v1388_v50 = vadd.f32 %v1387_v63, %v1288_v23  ;;  %v1332_v51 = vadd.f32 %v1331_v9, %v1287_v32  ;;  %v1547_v32 = vld [vmem:[%s3407_s1 + $0x470] sm:$0xff]  ;;  %v1637_v63 = vld [vmem:[%s3407_s1 + $0x518] sm:$0xff] }
 0x23b   : > { %v1323_v42 = vrot.slane %v1322_v48, 1  ;;  %v1341_v15 = vmul.f32 0.125, %v1318_v49  ;;  %v1411_v21 = vsel %vm314_vm4, %v1340_v59, %v1410_v47  ;;  %v1368_v10 = vadd.f32 %v1367_v44, %v1366_v53  ;;  %v1634_v59 = vld [vmem:[%s3407_s1 + $0x500] sm:$0xff]  ;;  %v1639_v49 = vld [vmem:[%s3407_s1 + $0x528] sm:$0xff]  ;;  %v1640_v47 = vld [vmem:[%s3407_s1 + $0x530] sm:$0xff] }
 0x23c   : > { %v1384_v28 = vadd.f32 %v1383_v12, %v1382_v4  ;;  %v1328_v6 = vadd.f32 %v1327_v5, %v1326_v38  ;;  %v1389_v24 = vrot.slane %v1388_v50, 2  ;;  %v1333_v61 = vrot.slane %v1332_v51, 2  ;;  %v1636_v4 = vld [vmem:[%s3407_s1 + $0x510] sm:$0xff]  ;;  %v1641_v12 = vld [vmem:[%s3407_s1 + $0x538] sm:$0xff] }
 0x23d   : > { %v1324_v31 = vadd.f32 %v1323_v42, %v1322_v48  ;;  %v1412_v2 = vsel %vm316_vm5, %v1341_v15, %v1411_v21  ;;  %v1374_v43 = vadd.f32 %v1373_v22, %v1372_v29  ;;  %v1378_v27 = vadd.f32 %v1377_v25, %v1376_v60  ;;  %v1644_v15 = vld [vmem:[%s3407_s1 + $0x550] sm:$0xff]  ;;  %v1645_v21 = vld [vmem:[%s3407_s1 + $0x558] sm:$0xff] }
 0x23e   : > { %v1385_v8 = vrot.slane %v1384_v28, 1  ;;  %v1329_v30 = vrot.slane %v1328_v6, 1  ;;  %v1390_v46 = vadd.f32 %v1389_v24, %v1388_v50  ;;  %v1334_v40 = vadd.f32 %v1333_v61, %v1332_v51  ;;  %v1642_v50 = vld [vmem:[%s3407_s1 + $0x540] sm:$0xff]  ;;  %v1643_v51 = vld [vmem:[%s3407_s1 + $0x548] sm:$0xff] }
 0x23f   : > { %v1342_v52 = vmul.f32 0.125, %v1324_v31  ;;  %v1379_v16 = vrot.slane %v1378_v27, 1  ;;  %v1396_v17 = vmul.f32 0.125, %v1368_v10  ;;  %v1425_v54 = vsel %vm310_vm2, %v1394_v0, %v1393_v18 }
 0x240   : > { %v1386_v45 = vadd.f32 %v1385_v8, %v1384_v28  ;;  %v1330_v20 = vadd.f32 %v1329_v30, %v1328_v6  ;;  %v1335_v1 = vrot.slane %v1334_v40, 1  ;;  %v1391_v19 = vrot.slane %v1390_v46, 1  ;;  %v1951_v28 = vld [vmem:[%s3407_s1 + $0x380] ss:$0 sm:$0xff] }
 0x241   : > { %v1413_v56 = vsel %vm318_vm6, %v1342_v52, %v1412_v2  ;;  %v1380_v57 = vadd.f32 %v1379_v16, %v1378_v27  ;;  %v1426_v53 = vsel %vm312_vm3, %v1395_v11, %v1425_v54  ;;  %v1397_v60 = vmul.f32 0.125, %v1374_v43  ;;  %v1638_v11 = vld [vmem:[%s3407_s1 + $0x520] sm:$0xff]  ;;  %v1648_v52 = vld [vmem:[%s3407_s1 + $0x570] sm:$0xff]  ;;  %v1728_v54 = vld [vmem:[%s3407_s1 + $0x608] sm:$0xff] }
 0x242   : > { %v1336_v36 = vadd.f32 %v1335_v1, %v1334_v40  ;;  %v1343_v37 = vmul.f32 0.125, %v1330_v20  ;;  %v1392_v29 = vadd.f32 %v1391_v19, %v1390_v46  ;;  %v1427_v35 = vsel %vm314_vm4, %v1396_v17, %v1426_v53  ;;  %v1646_v30 = vld [vmem:[%s3407_s1 + $0x560] sm:$0xff]  ;;  %v1647_v46 = vld [vmem:[%s3407_s1 + $0x568] sm:$0xff]  ;;  %v1730_v1 = vld [vmem:[%s3407_s1 + $0x618] sm:$0xff] }
 0x243   : > { %v1398_v33 = vmul.f32 0.125, %v1380_v57  ;;  %v1399_v18 = vmul.f32 0.125, %v1386_v45  ;;  %v1428_v0 = vsel %vm316_vm5, %v1397_v60, %v1427_v35  ;;  %v2486_v23 = vpack.c.bf16 %v1546_v58, %v1545_v39  ;;  %v1727_v17 = vld [vmem:[%s3407_s1 + $0x600] sm:$0xff]  ;;  %v1729_v45 = vld [vmem:[%s3407_s1 + $0x610] sm:$0xff]  ;;  %v1732_v57 = vld [vmem:[%s3407_s1 + $0x628] sm:$0xff] }
 0x244   : > { %v1344_v55 = vmul.f32 0.125, %v1336_v36  ;;  %v1414_v14 = vsel %vm320_vm7, %v1343_v37, %v1413_v56  ;;  %v1400_v34 = vmul.f32 0.125, %v1392_v29  ;;  %v2490_v41 = vpack.c.bf16 %v1548_v13, %v1547_v32  ;;  %v1731_v56 = vld [vmem:[%s3407_s1 + $0x620] sm:$0xff]  ;;  %v1733_v36 = vld [vmem:[%s3407_s1 + $0x630] sm:$0xff]  ;;  %v1734_v37 = vld [vmem:[%s3407_s1 + $0x638] sm:$0xff] }
 0x245   : > { %v1429_v44 = vsel %vm318_vm6, %v1398_v33, %v1428_v0  ;;  %2487 = vmatprep.subr.bf16.mxu1 %v2486_v23  ;;  %v2495_v38 = vpack.c.bf16 %v1635_v62, %v1634_v59  ;;  %v2498_v9 = vpack.c.bf16 %v1637_v63, %v1636_v4  ;;  %v2501_v48 = vpack.c.bf16 %v1639_v49, %v1638_v11  ;;  %v1735_v60 = vld [vmem:[%s3407_s1 + $0x640] sm:$0xff]  ;;  %v1736_v33 = vld [vmem:[%s3407_s1 + $0x648] sm:$0xff]  ;;  %v1741_v62 = vld [vmem:[%s3407_s1 + $0x670] sm:$0xff] }
 0x246   : > { %v1415_v22 = vsel %vm322_vm8, %v1344_v55, %v1414_v14  ;;  %v1430_v25 = vsel %vm320_vm7, %v1399_v18, %v1429_v44  ;;  %2489 = vmatpush3.bf16.msra.mxu1 %v2486_v23  ;;  %v2504_v5 = vpack.c.bf16 %v1641_v12, %v1640_v47  ;;  %v2507_v42 = vpack.c.bf16 %v1643_v51, %v1642_v50  ;;  %v1737_v55 = vld [vmem:[%s3407_s1 + $0x650] sm:$0xff]  ;;  %v1738_v14 = vld [vmem:[%s3407_s1 + $0x658] sm:$0xff]  ;;  %v1952_v0 = vld [vmem:[%s3407_s1 + $0x480] ss:$0 sm:$0xff] }
 0x247   : > { %2259 = vmatprep.mubr.f32.mxu0 %v1415_v22  ;;  %v1431_v26 = vsel %vm322_vm8, %v1400_v34, %v1430_v25  ;;  %2491 = vmatprep.subr.bf16.mxu1 %v2490_v41  ;;  %v2510_v10 = vpack.c.bf16 %v1645_v21, %v1644_v15  ;;  %v2513_v40 = vpack.c.bf16 %v1647_v46, %v1646_v30  ;;  %v1739_v13 = vld [vmem:[%s3407_s1 + $0x660] sm:$0xff]  ;;  %v1742_v4 = vld [vmem:[%s3407_s1 + $0x678] sm:$0xff] }
 0x248   : > { %2260 = vmatmul.mubr.f32.vlgmr.msra.gmra.mrb[4].mxu0 %v1431_v26  ;;  %v2519_v20 = vpack.c.bf16 %v1728_v54, %v1727_v17  ;;  %v2522_v19 = vpack.c.bf16 %v1730_v1, %v1729_v45  ;;  %v2525_v53 = vpack.c.bf16 %v1732_v57, %v1731_v56  ;;  %v2528_v29 = vpack.c.bf16 %v1734_v37, %v1733_v36  ;;  %v1953_v63 = vld [vmem:[%s3407_s1 + $0x580] ss:$0 sm:$0xff] }
 0x249   : > { %2329 = vmatprep.mubr.msk.f32.mxu0 %vm2596_vm0, %v2597_v7  ;;  %2496 = vmatpush3.bf16.msra.mxu0 %v2495_v38  ;;  %v2531_v35 = vpack.c.bf16 %v1736_v33, %v1735_v60  ;;  %v2534_v18 = vpack.c.bf16 %v1738_v14, %v1737_v55  ;;  %v2540_v38 = vpack.c.bf16 %v1742_v4, %v1741_v62  ;;  %v1954_v47 = vld [vmem:[%s3407_s1 + $0x680] ss:$0 sm:$0xff] }
 0x24a   : > { %2493 = vmatpush3.bf16.msra.mxu1 %v2490_v41  ;;  %2497 = vmatprep.subr.bf16.mxu0 %v2595_v3  ;;  %v1740_v41 = vld [vmem:[%s3407_s1 + $0x668] sm:$0xff] }
 0x24b   : > { %2518 = vmatprep.subr.bf16.mxu1 %v2595_v3  ;;  %v2537_v59 = vpack.c.bf16 %v1740_v41, %v1739_v13 }
 0x24d   : > { %2499 = vmatpush3.bf16.msra.mxu0 %v2498_v9 }
 0x24e   : > { %2500 = vmatprep.subr.bf16.mxu0 %v2595_v3 }
 0x251   : > { %2502 = vmatpush3.bf16.msra.mxu0 %v2501_v48 }
 0x252   : > { %2503 = vmatprep.subr.bf16.mxu0 %v2595_v3 }
 0x255   : > { %2505 = vmatpush3.bf16.msra.mxu0 %v2504_v5 }
 0x256   : > { %2506 = vmatprep.subr.bf16.mxu0 %v2595_v3 }
 0x259   : > { %2508 = vmatpush3.bf16.msra.mxu0 %v2507_v42 }
 0x25a   : > { %2509 = vmatprep.subr.bf16.mxu0 %v2595_v3 }
 0x25d   : > { %2511 = vmatpush3.bf16.msra.mxu0 %v2510_v10 }
 0x25e   : > { %2512 = vmatprep.subr.bf16.mxu0 %v2595_v3 }
 0x261   : > { %2514 = vmatpush3.bf16.msra.mxu0 %v2513_v40 }
 0x262   : > { %2515 = vmatprep.subr.bf16.mxu0 %v2595_v3 }
 0x31b   : > { %v2261_v6 = vpop.f32.mrb[4].mxu0 }
 0x31c   : > { %v1526_v24 = vadd.f32 %v2261_v6, %v1951_v28  ;;  %v1520_v61 = vpop.f32.mrb[5].mxu0 }
 0x31d   : > { %v1521_v31 = vadd.f32 %v1951_v28, %v1520_v61 }
 0x31e   : > { %v1530_v2 = vmul.f32 0.1, %v1526_v24 }
 0x31f   : > { %v1529_v43 = vmul.f32 0.1, %v1521_v31 }
 0x320   : > { %v1532_v8 = vmax.f32 %v1526_v24, %v1530_v2 }
 0x321   : > { %v1531_v27 = vmax.f32 %v1521_v31, %v1529_v43 }
 0x323   : > { %2294 = vmatprep.mubr.f32.mxu1 %v1531_v27 }
 0x324   : > { %2295 = vmatmul.mubr.f32.vlgmr.msra.gmra.mrb[32].mxu1 %v1532_v8 }
 0x325   : > { %2364 = vmatprep.mubr.msk.f32.mxu1 %vm2596_vm0, %v2597_v7  ;;  %v1649_v7 = vld [vmem:[%s3407_s1 + $0x578] sm:$0xff]  ;;  %2520 = vmatpush3.bf16.msra.mxu1 %v2519_v20 }
 0x326   : > { %v2516_v16 = vpack.c.bf16 %v1649_v7, %v1648_v52  ;;  %2521 = vmatprep.subr.bf16.mxu1 %v2595_v3 }
 0x328   : > { %2517 = vmatpush3.bf16.msra.mxu0 %v2516_v16 }
 0x329   : > { %2523 = vmatpush3.bf16.msra.mxu1 %v2522_v19 }
 0x32a   : > { %2524 = vmatprep.subr.bf16.mxu1 %v2595_v3 }
 0x32d   : > { %2526 = vmatpush3.bf16.msra.mxu1 %v2525_v53 }
 0x32e   : > { %2527 = vmatprep.subr.bf16.mxu1 %v2595_v3 }
 0x331   : > { %2529 = vmatpush3.bf16.msra.mxu1 %v2528_v29 }
 0x332   : > { %2530 = vmatprep.subr.bf16.mxu1 %v2595_v3 }
 0x335   : > { %2532 = vmatpush3.bf16.msra.mxu1 %v2531_v35 }
 0x336   : > { %2533 = vmatprep.subr.bf16.mxu1 %v2595_v3 }
 0x339   : > { %2535 = vmatpush3.bf16.msra.mxu1 %v2534_v18 }
 0x33a   : > { %2536 = vmatprep.subr.bf16.mxu1 %v2595_v3 }
 0x33d   : > { %2538 = vmatpush3.bf16.msra.mxu1 %v2537_v59 }
 0x33e   : > { %2539 = vmatprep.subr.bf16.mxu1 %v2595_v3 }
 0x341   : > { %2541 = vmatpush3.bf16.msra.mxu1 %v2540_v38 }
 0x3f7   : > { %v2296_v34 = vpop.f32.mrb[32].mxu1 }
 0x3f8   : > { %v1626_v44 = vadd.f32 %v2296_v34, %v1952_v0  ;;  %v1620_v22 = vpop.f32.mrb[33].mxu1 }
 0x3f9   : > { %v1621_v25 = vadd.f32 %v1952_v0, %v1620_v22 }
 0x3fa   : > { %v1630_v26 = vmul.f32 0.1, %v1626_v44 }
 0x3fb   : > { %v1629_v39 = vmul.f32 0.1, %v1621_v25 }
 0x3fc   : > { %v1632_v58 = vmax.f32 %v1626_v44, %v1630_v26 }
 0x3fd   : > { %v1631_v23 = vmax.f32 %v1621_v25, %v1629_v39 }
 0x3fe   : > { %1956 = vst [vmem:[%s3363_s28 + $0x10] sm:$0xff] %v1632_v58 }
 0x3ff   : > { %v1633_v32 = vadd.f32 %v1632_v58, %v1631_v23  ;;  %1955 = vst [vmem:[%s3363_s28 + $0x8] sm:$0xff] %v1631_v23 }
 0x401   : > { %2330 = vmatmul.mubr.f32.vlgmr.msra.gmra.mrb[6].mxu0 %v1633_v32 }
 0x405   : > { %v1869_v10 = vld [vmem:[%s3363_s28 + $0x10] sm:$0xff] (%p2636_p4) }
 0x406   : > { %v1867_v21 = vld [vmem:[%s3363_s28 + $0x8] sm:$0xff] (%p2636_p4)  ;;  %1870 = vst [vmem:[%s1833_s19 + $0x20] sm:$0xff] (%p2636_p4), %v1869_v10 }
 0x407   : > { %1868 = vst [vmem:[%s1833_s19 + $0x10] sm:$0xff] (%p2636_p4), %v1867_v21 }
 0x4d4   : > { %v1721_v9 = vpop.f32.mrb[6].mxu0 }
 0x4d5   : > { %v1722_v11 = vadd.f32 %v1953_v63, %v1721_v9  ;;  %v2331_v49 = vpop.f32.mrb[7].mxu0 }
 0x4d7   : > { %v1725_v48 = vmul.f32 0.1, %v1722_v11 }
 0x4d9   : > { %v1726_v3 = vmax.f32 %v1722_v11, %v1725_v48 }
 0x4db   : > { %2365 = vmatmul.mubr.f32.vlgmr.msra.gmra.mrb[34].mxu1 %v1726_v3 }
 0x5ae   : > { %v1814_v12 = vpop.f32.mrb[34].mxu1 }
 0x5af   : > { %v1815_v5 = vadd.f32 %v1954_v47, %v1814_v12  ;;  %v2366_v50 = vpop.f32.mrb[35].mxu1  ;;  %1831 = sbr.rel (!%p2636_p4) target bundleno = 1470 (0x5be), region = 32 }
 0x5b1   : > { %v1818_v51 = vmul.f32 0.1, %v1815_v5 }
 0x5b3   : > { %v1819_v42 = vmax.f32 %v1815_v5, %v1818_v51 }
 0x5b5   : > { %1820 = vst [vmem:[%s3363_s28] sm:$0xff] %v1819_v42 }
 0x5bc   : > { %v1865_v15 = vld [vmem:[%s3363_s28] sm:$0xff] }
 0x5bd   : > { %1866 = vst [vmem:[%s1833_s19] sm:$0xff] %v1865_v15 }
 0x5be PF: > { %p9_p8 = scmp.ge.s32.totalorder %s2627_s13, 4   ;;  %s3410_s9 = smov %s2589_s10 }
 0x5bf   : > { %s3411_s10 = smov %s2634_s16  ;;  %s3412_s11 = smov %s2627_s13 }
 0x5c0   :  { %11 = sbr.rel (!%p9_p8) target bundleno = 2 (0x2), region = 98 }

</bundles_post_ra>
